<compile_context>
chip_gen: v6e
topology: v6e:2x2x1
jax: 0.10.0
libtpu: 0.0.40
codegen_flags: <defaults>
</compile_context>

<pallas_src>
import functools

import jax
import jax.numpy as jnp
from jax.experimental import pallas as pl
from jax.experimental.pallas import tpu as pltpu


def _round_up(x: int, m: int) -> int:
    return (x + m - 1) // m * m


def _tpu_info():
    """Generation-aware knobs: physical VMEM, TCs per chip, MXU width."""
    try:
        kind = jax.devices()[0].device_kind.lower()
    except Exception:
        kind = ""
    if "v7" in kind:
        return dict(vmem=64 << 20, cores=2, mxu=256)
    if "v6" in kind:
        return dict(vmem=128 << 20, cores=1, mxu=256)
    if "v5" in kind:
        return dict(vmem=128 << 20, cores=1, mxu=128)
    # Unknown / emulator: stay conservative.
    return dict(vmem=64 << 20, cores=1, mxu=128)


# ---------------------------------------------------------------------------
# Kernels
# ---------------------------------------------------------------------------

def _fused_mlp_kernel(*refs, n_layers, stage):
    """Fused MLP: one batch tile per grid step, all weights VMEM-resident.

    refs = (x, w1, b1, ..., wN, bN, out[, h_scratch]).
    Linear + ReLU for every layer except the last; f32 MXU accumulation.
    Hidden activations are staged through a single reused VMEM scratch so at
    most one activation buffer is live across layer boundaries.
    """
    x_ref = refs[0]
    param_refs = refs[1:1 + 2 * n_layers]
    out_ref = refs[1 + 2 * n_layers]
    h_ref = refs[2 + 2 * n_layers] if stage else None

    h = x_ref[...]
    for i in range(n_layers):
        w = param_refs[2 * i][...]
        b = param_refs[2 * i + 1][...]                       # (1, N_pad) lane-aligned
        y = jnp.dot(h.astype(w.dtype), w, preferred_element_type=jnp.float32)
        y = y + b.astype(jnp.float32)                        # full-vreg VPU add
        if i < n_layers - 1:
            y = jnp.maximum(y, 0.0)                          # ReLU on hidden layers
            if stage:
                n_pad = w.shape[1]
                h_ref[:, :n_pad] = y                         # reuse one scratch buffer
                h = h_ref[:, :n_pad]
            else:
                h = y
        else:
            out_ref[...] = y.astype(out_ref.dtype)


def _streamed_linear_kernel(x_ref, w_ref, b_ref, o_ref, acc_ref, *, relu):
    """One Linear(+ReLU) layer, (M, N, K)-tiled, streaming weight tiles."""
    k = pl.program_id(2)

    @pl.when(k == 0)
    def _():
        acc_ref[...] = jnp.zeros_like(acc_ref)

    acc_ref[...] += jnp.dot(x_ref[...].astype(w_ref.dtype), w_ref[...],
                            preferred_element_type=jnp.float32)

    @pl.when(k == pl.num_programs(2) - 1)
    def _():
        y = acc_ref[...] + b_ref[...].astype(jnp.float32)
        if relu:
            y = jnp.maximum(y, 0.0)
        o_ref[...] = y.astype(o_ref.dtype)


# ---------------------------------------------------------------------------
# Parameter preparation (done once, reused across forward calls)
# ---------------------------------------------------------------------------

def init_params(key, input_size, hidden_sizes, output_size):
    """Deterministic init mimicking torch.nn.Linear default U[-1/sqrt(in), 1/sqrt(in)]."""
    dims = [input_size] + list(hidden_sizes) + [output_size]
    params = []
    for i in range(len(dims) - 1):
        fan_in, fan_out = dims[i], dims[i + 1]
        key, kw, kb = jax.random.split(key, 3)
        bound = 1.0 / jnp.sqrt(jnp.float32(fan_in))
        w = jax.random.uniform(kw, (fan_in, fan_out), jnp.float32, -bound, bound)
        b = jax.random.uniform(kb, (fan_out,), jnp.float32, -bound, bound)
        params.append((w, b))
    return params


def prepare_params(params, *, compute_dtype=jnp.float32):
    """Zero-pad weights/biases to lane-dense widths ONCE; cache and reuse.

    Padding is exact: padded input cols / weight rows contribute 0; padded
    output cols stay 0 through bias (0) and ReLU.
    """
    info = _tpu_info()
    cdtype = jax.dtypes.canonicalize_dtype(compute_dtype)

    def pad_dim(d):
        base = _round_up(d, 128)
        if info["mxu"] >= 256:                    # v6e / v7x: 2x256x256 MXU
            wide = _round_up(d, 256)
            if wide <= int(1.3 * base):           # gate on < ~30% extra padding waste
                return wide
        return base

    dims = [params[0][0].shape[0]] + [w.shape[1] for w, _ in params]
    dims_p = [pad_dim(d) for d in dims]

    weights, biases = [], []
    for li, (w, b) in enumerate(params):
        kp, np_ = dims_p[li], dims_p[li + 1]
        w_p = jnp.zeros((kp, np_), cdtype).at[: w.shape[0], : w.shape[1]].set(
            w.astype(cdtype))
        b_p = jnp.zeros((1, np_), jnp.float32).at[:, : b.shape[-1]].set(
            b.reshape(1, -1).astype(jnp.float32))
        weights.append(w_p)
        biases.append(b_p)

    param_bytes = sum(int(w.size) * w.dtype.itemsize for w in weights)
    param_bytes += sum(int(b.size) * 4 for b in biases)

    return dict(weights=weights, biases=biases, dims=dims, dims_p=dims_p,
                compute_dtype=cdtype, info=info, param_bytes=param_bytes)


# ---------------------------------------------------------------------------
# VMEM budgeting / tile selection
# ---------------------------------------------------------------------------

def _fused_vmem_estimate(tm, dims_p, cdtype, weight_buffers):
    cb = cdtype.itemsize
    w = sum(dims_p[i] * dims_p[i + 1] for i in range(len(dims_p) - 1)) * cb
    b = sum(dims_p[1:]) * 4
    x_tiles = 2 * tm * dims_p[0] * cb            # double-buffered activation in
    o_tiles = 2 * tm * dims_p[-1] * 4            # double-buffered activation out
    act = 2 * tm * max(dims_p[1:]) * 4           # staged scratch + one live temp
    return weight_buffers * (w + b) + x_tiles + o_tiles + act


def _streamed_vmem_estimate(tm, dims_p, cdtype):
    cb = cdtype.itemsize
    tk = min(512, max(dims_p[:-1]))
    tn = min(512, max(dims_p[1:]))
    return 2 * tm * tk * cb + 2 * tk * tn * cb + 2 * tn * 4 + 2 * tm * tn * 4 + tm * tn * 4


def _choose_tm(batch_r, dims_p, cdtype, info, budget, streaming):
    sub = 16 if cdtype == jnp.bfloat16 else 8
    cands = [t for t in (512, 384, 256, 128, 64, 32, 16, 8)
             if t % sub == 0 and t <= batch_r]
    if not cands:
        cands = [sub]
    feasible = []
    for t in cands:                              # descending
        bp = _round_up(batch_r, t)
        est = (_streamed_vmem_estimate(t, dims_p, cdtype) if streaming
               else _fused_vmem_estimate(t, dims_p, cdtype, weight_buffers=1))
        if est <= budget:
            feasible.append((t, bp))
    if not feasible:
        t = cands[-1]
        return t, _round_up(batch_r, t)
    # On v7x prefer the largest tm that still gives >= 2 batch tiles so both
    # TensorCores get work ("parallel" axis megacore-shards); no-op on 1-TC chips.
    for t, bp in feasible:
        if bp // t >= info["cores"]:
            return t, bp
    return feasible[0]


def _largest_tile(d_pad, cap=512):
    start = min(cap, d_pad)
    start -= start % 128
    for t in range(start, 127, -128):
        if d_pad % t == 0:
            return t
    return 128


# ---------------------------------------------------------------------------
# Forward paths
# ---------------------------------------------------------------------------

def _forward_fused(x_p, prepared, tm, batch_p, safe_cap):
    dims_p = prepared["dims_p"]
    cdtype = prepared["compute_dtype"]
    weights, biases = prepared["weights"], prepared["biases"]
    n_layers = len(weights)
    stage = n_layers >= 2
    grid = (batch_p // tm,)

    flat_inputs = [x_p]
    for li in range(n_layers):
        flat_inputs += [weights[li], biases[li]]

    scratch = ([pltpu.VMEM((tm, max(dims_p[1:-1])), jnp.float32)] if stage else [])

    def build(single_buffered):
        wb = 1 if single_buffered else 2
        est = _fused_vmem_estimate(tm, dims_p, cdtype, weight_buffers=wb)
        vmem_limit = min(safe_cap, max(32 << 20, int(est * 1.5)))
        in_specs = [pl.BlockSpec((tm, dims_p[0]), lambda i: (i, 0))]
        for li in range(n_layers):
            kp, np_ = dims_p[li], dims_p[li + 1]
            kw = dict(pipeline_mode=pl.Buffered(1)) if single_buffered else {}
            # Constant block index => fetched once, VMEM-resident across batch tiles.
            in_specs.append(pl.BlockSpec((kp, np_), lambda i: (0, 0), **kw))
            in_specs.append(pl.BlockSpec((1, np_), lambda i: (0, 0), **kw))
        return pl.pallas_call(
            functools.partial(_fused_mlp_kernel, n_layers=n_layers, stage=stage),
            grid=grid,
            in_specs=in_specs,
            out_specs=pl.BlockSpec((tm, dims_p[-1]), lambda i: (i, 0)),
            out_shape=jax.ShapeDtypeStruct((batch_p, dims_p[-1]), jnp.float32),
            scratch_shapes=scratch,
            compiler_params=pltpu.CompilerParams(
                dimension_semantics=("parallel",),
                vmem_limit_bytes=vmem_limit),
        )

    try:
        # Invariant weights/biases single-buffered: halves resident-param VMEM.
        return build(True)(*flat_inputs)
    except Exception:
        # Fallback for Pallas builds that reject pipeline_mode / Buffered(1).
        return build(False)(*flat_inputs)


def _forward_streamed(x_p, prepared, tm, batch_p, safe_cap):
    """Weight-streaming fallback: per-layer (M,N,K)-tiled matmul pallas_calls."""
    weights, biases = prepared["weights"], prepared["biases"]
    cdtype = prepared["compute_dtype"]
    cb = cdtype.itemsize
    n_layers = len(weights)

    h = x_p
    for i in range(n_layers):
        w_p, b_p = weights[i], biases[i]
        kp, np_ = w_p.shape
        tk, tn = _largest_tile(kp), _largest_tile(np_)
        relu = i < n_layers - 1
        out_dtype = cdtype if relu else jnp.float32
        est = (2 * tm * tk * cb + 2 * tk * tn * cb + 2 * tn * 4
               + 2 * tm * tn * 4 + tm * tn * 4)
        vmem_limit = min(safe_cap, max(32 << 20, int(est * 2)))
        h = pl.pallas_call(
            functools.partial(_streamed_linear_kernel, relu=relu),
            grid=(batch_p // tm, np_ // tn, kp // tk),
            in_specs=[
                pl.BlockSpec((tm, tk), lambda m, n, k: (m, k)),
                pl.BlockSpec((tk, tn), lambda m, n, k: (k, n)),
                pl.BlockSpec((1, tn), lambda m, n, k: (0, n)),
            ],
            out_specs=pl.BlockSpec((tm, tn), lambda m, n, k: (m, n)),
            out_shape=jax.ShapeDtypeStruct((batch_p, np_), out_dtype),
            scratch_shapes=[pltpu.VMEM((tm, tn), jnp.float32)],
            compiler_params=pltpu.CompilerParams(
                dimension_semantics=("parallel", "parallel", "arbitrary"),
                vmem_limit_bytes=vmem_limit),
        )(h, w_p, b_p)
    return h


def model_parallel_network_forward(x, prepared, *, block_m=None,
                                   force_streaming=False):
    """Fused ModelParallelNetwork forward (device placement has no math effect)."""
    info = prepared["info"]
    cdtype = prepared["compute_dtype"]
    dims, dims_p = prepared["dims"], prepared["dims_p"]
    batch, in_dim = x.shape
    assert in_dim == dims[0]

    safe_cap = int(info["vmem"] * 0.75)          # leave Mosaic headroom (v7x: ~48 MiB)
    use_streaming = force_streaming or prepared["param_bytes"] > int(0.45 * safe_cap)

    sub = 16 if cdtype == jnp.bfloat16 else 8    # bf16 packs (16,128) sublane tiles
    batch_r = _round_up(batch, sub)
    if block_m is not None:
        tm = max(sub, (min(block_m, batch_r) // sub) * sub)
        batch_p = _round_up(batch_r, tm)
    else:
        tm, batch_p = _choose_tm(batch_r, dims_p, cdtype, info, safe_cap, use_streaming)

    # Pad input (zeros in padded rows/cols are numerically inert).
    x_p = jnp.zeros((batch_p, dims_p[0]), cdtype).at[:batch, :in_dim].set(
        x.astype(cdtype))

    if use_streaming:
        out_p = _forward_streamed(x_p, prepared, tm, batch_p, safe_cap)
    else:
        out_p = _forward_fused(x_p, prepared, tm, batch_p, safe_cap)

    # Slice away batch / output padding.
    return out_p[:batch, :dims[-1]].astype(jnp.float32)


def reference_forward(x, params):
    """Pure-JAX reference (same math as the PyTorch module)."""
    h = x
    n = len(params)
    for i, (w, b) in enumerate(params):
        h = h @ w + b
        if i < n - 1:
            h = jnp.maximum(h, 0.0)
    return h


# TODO(synk): the PyTorch module's cuda:0 -> cuda:1 transfer-time bookkeeping
# (get_avg_transfer_time) has no TPU-kernel equivalent and is not modeled.

if __name__ == "__main__":
    # Small shapes consistent with the module's MLP structure
    # (input -> 4 hidden layers -> output), scaled down.
    batch = 8
    input_size = 32
    hidden_sizes = [64, 48, 40, 24]
    output_size = 10

    key = jax.random.PRNGKey(0)
    key, kx = jax.random.split(key)
    x = jax.random.normal(kx, (batch, input_size), jnp.float32)
    params = init_params(key, input_size, hidden_sizes, output_size)
    ref = reference_forward(x, params)

    # --- f32 operands (default): tight tolerance -------------------------
    prepared_f32 = prepare_params(params, compute_dtype=jnp.float32)
    out = jax.block_until_ready(model_parallel_network_forward(x, prepared_f32))
    assert out.shape == (batch, output_size)
    assert jnp.allclose(out, ref, atol=1e-4, rtol=1e-4), "f32 fused path mismatch"

    # --- multi-tile batch (exercises the batch-tiled grid) ----------------
    batch2 = 40
    key, kx2 = jax.random.split(key)
    x2 = jax.random.normal(kx2, (batch2, input_size), jnp.float32)
    ref2 = reference_forward(x2, params)
    out2 = jax.block_until_ready(
        model_parallel_network_forward(x2, prepared_f32, block_m=16))
    assert jnp.allclose(out2, ref2, atol=1e-4, rtol=1e-4), "multi-tile path mismatch"

    # --- bf16 operands (v6e/v7x MXU fast path), relaxed tolerance ---------
    prepared_bf16 = prepare_params(params, compute_dtype=jnp.bfloat16)
    out_bf16 = jax.block_until_ready(
        model_parallel_network_forward(x, prepared_bf16))
    assert jnp.allclose(out_bf16, ref, atol=3e-2, rtol=3e-2), "bf16 path mismatch"

    # --- weight-streaming fallback (used when params exceed VMEM budget) --
    out_stream = jax.block_until_ready(
        model_parallel_network_forward(x, prepared_f32, force_streaming=True))
    assert jnp.allclose(out_stream, ref, atol=1e-4, rtol=1e-4), "streamed path mismatch"

    print("KERNEL_OK")
</pallas_src>

<mosaic_0001>
module attributes {stable_mosaic.version = 11 : i64} {
  func.func @_fused_mlp_kernel(%arg0: i32, %arg1: memref<8x128xf32, #tpu.memory_space<vmem>>, %arg2: memref<128x128xf32, #tpu.memory_space<vmem>>, %arg3: memref<1x128xf32, #tpu.memory_space<vmem>>, %arg4: memref<128x128xf32, #tpu.memory_space<vmem>>, %arg5: memref<1x128xf32, #tpu.memory_space<vmem>>, %arg6: memref<128x128xf32, #tpu.memory_space<vmem>>, %arg7: memref<1x128xf32, #tpu.memory_space<vmem>>, %arg8: memref<128x128xf32, #tpu.memory_space<vmem>>, %arg9: memref<1x128xf32, #tpu.memory_space<vmem>>, %arg10: memref<128x128xf32, #tpu.memory_space<vmem>>, %arg11: memref<1x128xf32, #tpu.memory_space<vmem>>, %arg12: memref<8x128xf32, #tpu.memory_space<vmem>>, %arg13: memref<8x128xf32, #tpu.memory_space<vmem>>) attributes {dimension_semantics = [#tpu.dimension_semantics<parallel>], iteration_bounds = array<i64: 1>, scalar_prefetch = 0 : i64, scratch_operands = 1 : i64, tpu.core_type = #tpu.core_type<tc>, window_params = [{transform_indices = @transform_0, window_bounds = array<i64: 8, 128>}, {pipeline_mode = #tpu.pipeline_mode<synchronous>, transform_indices = @transform_1, window_bounds = array<i64: 128, 128>}, {pipeline_mode = #tpu.pipeline_mode<synchronous>, transform_indices = @transform_2, window_bounds = array<i64: 1, 128>}, {pipeline_mode = #tpu.pipeline_mode<synchronous>, transform_indices = @transform_3, window_bounds = array<i64: 128, 128>}, {pipeline_mode = #tpu.pipeline_mode<synchronous>, transform_indices = @transform_4, window_bounds = array<i64: 1, 128>}, {pipeline_mode = #tpu.pipeline_mode<synchronous>, transform_indices = @transform_5, window_bounds = array<i64: 128, 128>}, {pipeline_mode = #tpu.pipeline_mode<synchronous>, transform_indices = @transform_6, window_bounds = array<i64: 1, 128>}, {pipeline_mode = #tpu.pipeline_mode<synchronous>, transform_indices = @transform_7, window_bounds = array<i64: 128, 128>}, {pipeline_mode = #tpu.pipeline_mode<synchronous>, transform_indices = @transform_8, window_bounds = array<i64: 1, 128>}, {pipeline_mode = #tpu.pipeline_mode<synchronous>, transform_indices = @transform_9, window_bounds = array<i64: 128, 128>}, {pipeline_mode = #tpu.pipeline_mode<synchronous>, transform_indices = @transform_10, window_bounds = array<i64: 1, 128>}, {transform_indices = @transform_11, window_bounds = array<i64: 8, 128>}]} {
    %c0 = arith.constant 0 : index
    %c0_0 = arith.constant 0 : index
    %0 = vector.load %arg1[%c0, %c0_0] : memref<8x128xf32, #tpu.memory_space<vmem>>, vector<8x128xf32>
    %c0_1 = arith.constant 0 : index
    %c0_2 = arith.constant 0 : index
    %1 = vector.load %arg2[%c0_1, %c0_2] : memref<128x128xf32, #tpu.memory_space<vmem>>, vector<128x128xf32>
    %c0_3 = arith.constant 0 : index
    %c0_4 = arith.constant 0 : index
    %2 = vector.load %arg3[%c0_3, %c0_4] : memref<1x128xf32, #tpu.memory_space<vmem>>, vector<1x128xf32>
    %cst = arith.constant dense<0.000000e+00> : vector<8x128xf32>
    %3 = tpu.matmul %0, %1, %cst {dimension_numbers = #tpu.dot_dimension_numbers<[1], [0], [0], [1], [0, 0, 1, 1], [], []>} : vector<8x128xf32>, vector<128x128xf32>, vector<8x128xf32> -> vector<8x128xf32>
    %4 = vector.broadcast %2 : vector<1x128xf32> to vector<8x128xf32>
    %5 = arith.addf %3, %4 : vector<8x128xf32>
    %cst_5 = arith.constant 0.000000e+00 : f32
    %6 = vector.broadcast %cst_5 : f32 to vector<8x128xf32>
    %7 = arith.maximumf %5, %6 : vector<8x128xf32>
    %c0_6 = arith.constant 0 : index
    %c0_7 = arith.constant 0 : index
    %8 = vector.load %arg13[%c0_6, %c0_7] : memref<8x128xf32, #tpu.memory_space<vmem>>, vector<8x128xf32>
    tpu.vector_store %arg13[%c0_6, %c0_7], %7 {strides = array<i32>} : memref<8x128xf32, #tpu.memory_space<vmem>>, vector<8x128xf32>,
    %c0_8 = arith.constant 0 : index
    %c0_9 = arith.constant 0 : index
    %9 = vector.load %arg13[%c0_8, %c0_9] : memref<8x128xf32, #tpu.memory_space<vmem>>, vector<8x128xf32>
    %c0_10 = arith.constant 0 : index
    %c0_11 = arith.constant 0 : index
    %10 = vector.load %arg4[%c0_10, %c0_11] : memref<128x128xf32, #tpu.memory_space<vmem>>, vector<128x128xf32>
    %c0_12 = arith.constant 0 : index
    %c0_13 = arith.constant 0 : index
    %11 = vector.load %arg5[%c0_12, %c0_13] : memref<1x128xf32, #tpu.memory_space<vmem>>, vector<1x128xf32>
    %cst_14 = arith.constant dense<0.000000e+00> : vector<8x128xf32>
    %12 = tpu.matmul %9, %10, %cst_14 {dimension_numbers = #tpu.dot_dimension_numbers<[1], [0], [0], [1], [0, 0, 1, 1], [], []>} : vector<8x128xf32>, vector<128x128xf32>, vector<8x128xf32> -> vector<8x128xf32>
    %13 = vector.broadcast %11 : vector<1x128xf32> to vector<8x128xf32>
    %14 = arith.addf %12, %13 : vector<8x128xf32>
    %cst_15 = arith.constant 0.000000e+00 : f32
    %15 = vector.broadcast %cst_15 : f32 to vector<8x128xf32>
    %16 = arith.maximumf %14, %15 : vector<8x128xf32>
    %c0_16 = arith.constant 0 : index
    %c0_17 = arith.constant 0 : index
    %17 = vector.load %arg13[%c0_16, %c0_17] : memref<8x128xf32, #tpu.memory_space<vmem>>, vector<8x128xf32>
    tpu.vector_store %arg13[%c0_16, %c0_17], %16 {strides = array<i32>} : memref<8x128xf32, #tpu.memory_space<vmem>>, vector<8x128xf32>,
    %c0_18 = arith.constant 0 : index
    %c0_19 = arith.constant 0 : index
    %18 = vector.load %arg13[%c0_18, %c0_19] : memref<8x128xf32, #tpu.memory_space<vmem>>, vector<8x128xf32>
    %c0_20 = arith.constant 0 : index
    %c0_21 = arith.constant 0 : index
    %19 = vector.load %arg6[%c0_20, %c0_21] : memref<128x128xf32, #tpu.memory_space<vmem>>, vector<128x128xf32>
    %c0_22 = arith.constant 0 : index
    %c0_23 = arith.constant 0 : index
    %20 = vector.load %arg7[%c0_22, %c0_23] : memref<1x128xf32, #tpu.memory_space<vmem>>, vector<1x128xf32>
    %cst_24 = arith.constant dense<0.000000e+00> : vector<8x128xf32>
    %21 = tpu.matmul %18, %19, %cst_24 {dimension_numbers = #tpu.dot_dimension_numbers<[1], [0], [0], [1], [0, 0, 1, 1], [], []>} : vector<8x128xf32>, vector<128x128xf32>, vector<8x128xf32> -> vector<8x128xf32>
    %22 = vector.broadcast %20 : vector<1x128xf32> to vector<8x128xf32>
    %23 = arith.addf %21, %22 : vector<8x128xf32>
    %cst_25 = arith.constant 0.000000e+00 : f32
    %24 = vector.broadcast %cst_25 : f32 to vector<8x128xf32>
    %25 = arith.maximumf %23, %24 : vector<8x128xf32>
    %c0_26 = arith.constant 0 : index
    %c0_27 = arith.constant 0 : index
    %26 = vector.load %arg13[%c0_26, %c0_27] : memref<8x128xf32, #tpu.memory_space<vmem>>, vector<8x128xf32>
    tpu.vector_store %arg13[%c0_26, %c0_27], %25 {strides = array<i32>} : memref<8x128xf32, #tpu.memory_space<vmem>>, vector<8x128xf32>,
    %c0_28 = arith.constant 0 : index
    %c0_29 = arith.constant 0 : index
    %27 = vector.load %arg13[%c0_28, %c0_29] : memref<8x128xf32, #tpu.memory_space<vmem>>, vector<8x128xf32>
    %c0_30 = arith.constant 0 : index
    %c0_31 = arith.constant 0 : index
    %28 = vector.load %arg8[%c0_30, %c0_31] : memref<128x128xf32, #tpu.memory_space<vmem>>, vector<128x128xf32>
    %c0_32 = arith.constant 0 : index
    %c0_33 = arith.constant 0 : index
    %29 = vector.load %arg9[%c0_32, %c0_33] : memref<1x128xf32, #tpu.memory_space<vmem>>, vector<1x128xf32>
    %cst_34 = arith.constant dense<0.000000e+00> : vector<8x128xf32>
    %30 = tpu.matmul %27, %28, %cst_34 {dimension_numbers = #tpu.dot_dimension_numbers<[1], [0], [0], [1], [0, 0, 1, 1], [], []>} : vector<8x128xf32>, vector<128x128xf32>, vector<8x128xf32> -> vector<8x128xf32>
    %31 = vector.broadcast %29 : vector<1x128xf32> to vector<8x128xf32>
    %32 = arith.addf %30, %31 : vector<8x128xf32>
    %cst_35 = arith.constant 0.000000e+00 : f32
    %33 = vector.broadcast %cst_35 : f32 to vector<8x128xf32>
    %34 = arith.maximumf %32, %33 : vector<8x128xf32>
    %c0_36 = arith.constant 0 : index
    %c0_37 = arith.constant 0 : index
    %35 = vector.load %arg13[%c0_36, %c0_37] : memref<8x128xf32, #tpu.memory_space<vmem>>, vector<8x128xf32>
    tpu.vector_store %arg13[%c0_36, %c0_37], %34 {strides = array<i32>} : memref<8x128xf32, #tpu.memory_space<vmem>>, vector<8x128xf32>,
    %c0_38 = arith.constant 0 : index
    %c0_39 = arith.constant 0 : index
    %36 = vector.load %arg13[%c0_38, %c0_39] : memref<8x128xf32, #tpu.memory_space<vmem>>, vector<8x128xf32>
    %c0_40 = arith.constant 0 : index
    %c0_41 = arith.constant 0 : index
    %37 = vector.load %arg10[%c0_40, %c0_41] : memref<128x128xf32, #tpu.memory_space<vmem>>, vector<128x128xf32>
    %c0_42 = arith.constant 0 : index
    %c0_43 = arith.constant 0 : index
    %38 = vector.load %arg11[%c0_42, %c0_43] : memref<1x128xf32, #tpu.memory_space<vmem>>, vector<1x128xf32>
    %cst_44 = arith.constant dense<0.000000e+00> : vector<8x128xf32>
    %39 = tpu.matmul %36, %37, %cst_44 {dimension_numbers = #tpu.dot_dimension_numbers<[1], [0], [0], [1], [0, 0, 1, 1], [], []>} : vector<8x128xf32>, vector<128x128xf32>, vector<8x128xf32> -> vector<8x128xf32>
    %40 = vector.broadcast %38 : vector<1x128xf32> to vector<8x128xf32>
    %41 = arith.addf %39, %40 : vector<8x128xf32>
    %c0_45 = arith.constant 0 : index
    %c0_46 = arith.constant 0 : index
    %42 = vector.load %arg12[%c0_45, %c0_46] : memref<8x128xf32, #tpu.memory_space<vmem>>, vector<8x128xf32>
    tpu.vector_store %arg12[%c0_45, %c0_46], %41 {strides = array<i32>} : memref<8x128xf32, #tpu.memory_space<vmem>>, vector<8x128xf32>,
    return
  }
  func.func @transform_0(%arg0: i32) -> (i32, i32) {
    %c0_i32 = arith.constant 0 : i32
    %c0_i32_0 = arith.constant 0 : i32
    return %arg0, %c0_i32 : i32, i32
  }
  func.func @transform_1(%arg0: i32) -> (i32, i32) {
    %c0_i32 = arith.constant 0 : i32
    %c0_i32_0 = arith.constant 0 : i32
    %c0_i32_1 = arith.constant 0 : i32
    return %c0_i32, %c0_i32_0 : i32, i32
  }
  func.func @transform_2(%arg0: i32) -> (i32, i32) {
    %c0_i32 = arith.constant 0 : i32
    %c0_i32_0 = arith.constant 0 : i32
    %c0_i32_1 = arith.constant 0 : i32
    return %c0_i32, %c0_i32_0 : i32, i32
  }
  func.func @transform_3(%arg0: i32) -> (i32, i32) {
    %c0_i32 = arith.constant 0 : i32
    %c0_i32_0 = arith.constant 0 : i32
    %c0_i32_1 = arith.constant 0 : i32
    return %c0_i32, %c0_i32_0 : i32, i32
  }
  func.func @transform_4(%arg0: i32) -> (i32, i32) {
    %c0_i32 = arith.constant 0 : i32
    %c0_i32_0 = arith.constant 0 : i32
    %c0_i32_1 = arith.constant 0 : i32
    return %c0_i32, %c0_i32_0 : i32, i32
  }
  func.func @transform_5(%arg0: i32) -> (i32, i32) {
    %c0_i32 = arith.constant 0 : i32
    %c0_i32_0 = arith.constant 0 : i32
    %c0_i32_1 = arith.constant 0 : i32
    return %c0_i32, %c0_i32_0 : i32, i32
  }
  func.func @transform_6(%arg0: i32) -> (i32, i32) {
    %c0_i32 = arith.constant 0 : i32
    %c0_i32_0 = arith.constant 0 : i32
    %c0_i32_1 = arith.constant 0 : i32
    return %c0_i32, %c0_i32_0 : i32, i32
  }
  func.func @transform_7(%arg0: i32) -> (i32, i32) {
    %c0_i32 = arith.constant 0 : i32
    %c0_i32_0 = arith.constant 0 : i32
    %c0_i32_1 = arith.constant 0 : i32
    return %c0_i32, %c0_i32_0 : i32, i32
  }
  func.func @transform_8(%arg0: i32) -> (i32, i32) {
    %c0_i32 = arith.constant 0 : i32
    %c0_i32_0 = arith.constant 0 : i32
    %c0_i32_1 = arith.constant 0 : i32
    return %c0_i32, %c0_i32_0 : i32, i32
  }
  func.func @transform_9(%arg0: i32) -> (i32, i32) {
    %c0_i32 = arith.constant 0 : i32
    %c0_i32_0 = arith.constant 0 : i32
    %c0_i32_1 = arith.constant 0 : i32
    return %c0_i32, %c0_i32_0 : i32, i32
  }
  func.func @transform_10(%arg0: i32) -> (i32, i32) {
    %c0_i32 = arith.constant 0 : i32
    %c0_i32_0 = arith.constant 0 : i32
    %c0_i32_1 = arith.constant 0 : i32
    return %c0_i32, %c0_i32_0 : i32, i32
  }
  func.func @transform_11(%arg0: i32) -> (i32, i32) {
    %c0_i32 = arith.constant 0 : i32
    %c0_i32_0 = arith.constant 0 : i32
    return %arg0, %c0_i32 : i32, i32
  }
}

module attributes {stable_mosaic.version = 11 : i64} {
  func.func @_fused_mlp_kernel(%arg0: i32, %arg1: memref<8x128xf32, #tpu.memory_space<vmem>>, %arg2: memref<128x128xf32, #tpu.memory_space<vmem>>, %arg3: memref<1x128xf32, #tpu.memory_space<vmem>>, %arg4: memref<128x128xf32, #tpu.memory_space<vmem>>, %arg5: memref<1x128xf32, #tpu.memory_space<vmem>>, %arg6: memref<128x128xf32, #tpu.memory_space<vmem>>, %arg7: memref<1x128xf32, #tpu.memory_space<vmem>>, %arg8: memref<128x128xf32, #tpu.memory_space<vmem>>, %arg9: memref<1x128xf32, #tpu.memory_space<vmem>>, %arg10: memref<128x128xf32, #tpu.memory_space<vmem>>, %arg11: memref<1x128xf32, #tpu.memory_space<vmem>>, %arg12: memref<8x128xf32, #tpu.memory_space<vmem>>, %arg13: memref<8x128xf32, #tpu.memory_space<vmem>>) attributes {dimension_semantics = [#tpu.dimension_semantics<parallel>], iteration_bounds = array<i64: 1>, scalar_prefetch = 0 : i64, scratch_operands = 1 : i64, tpu.core_type = #tpu.core_type<tc>, window_params = [{transform_indices = @transform_0, window_bounds = array<i64: 8, 128>}, {pipeline_mode = #tpu.pipeline_mode<synchronous>, transform_indices = @transform_1, window_bounds = array<i64: 128, 128>}, {pipeline_mode = #tpu.pipeline_mode<synchronous>, transform_indices = @transform_2, window_bounds = array<i64: 1, 128>}, {pipeline_mode = #tpu.pipeline_mode<synchronous>, transform_indices = @transform_3, window_bounds = array<i64: 128, 128>}, {pipeline_mode = #tpu.pipeline_mode<synchronous>, transform_indices = @transform_4, window_bounds = array<i64: 1, 128>}, {pipeline_mode = #tpu.pipeline_mode<synchronous>, transform_indices = @transform_5, window_bounds = array<i64: 128, 128>}, {pipeline_mode = #tpu.pipeline_mode<synchronous>, transform_indices = @transform_6, window_bounds = array<i64: 1, 128>}, {pipeline_mode = #tpu.pipeline_mode<synchronous>, transform_indices = @transform_7, window_bounds = array<i64: 128, 128>}, {pipeline_mode = #tpu.pipeline_mode<synchronous>, transform_indices = @transform_8, window_bounds = array<i64: 1, 128>}, {pipeline_mode = #tpu.pipeline_mode<synchronous>, transform_indices = @transform_9, window_bounds = array<i64: 128, 128>}, {pipeline_mode = #tpu.pipeline_mode<synchronous>, transform_indices = @transform_10, window_bounds = array<i64: 1, 128>}, {transform_indices = @transform_11, window_bounds = array<i64: 8, 128>}]} {
    %c0 = arith.constant 0 : index
    %c0_0 = arith.constant 0 : index
    %0 = vector.load %arg1[%c0, %c0_0] : memref<8x128xf32, #tpu.memory_space<vmem>>, vector<8x128xf32>
    %c0_1 = arith.constant 0 : index
    %c0_2 = arith.constant 0 : index
    %1 = vector.load %arg2[%c0_1, %c0_2] : memref<128x128xf32, #tpu.memory_space<vmem>>, vector<128x128xf32>
    %c0_3 = arith.constant 0 : index
    %c0_4 = arith.constant 0 : index
    %2 = vector.load %arg3[%c0_3, %c0_4] : memref<1x128xf32, #tpu.memory_space<vmem>>, vector<1x128xf32>
    %cst = arith.constant dense<0.000000e+00> : vector<8x128xf32>
    %3 = tpu.matmul %0, %1, %cst {dimension_numbers = #tpu.dot_dimension_numbers<[1], [0], [0], [1], [0, 0, 1, 1], [], []>} : vector<8x128xf32>, vector<128x128xf32>, vector<8x128xf32> -> vector<8x128xf32>
    %4 = vector.broadcast %2 : vector<1x128xf32> to vector<8x128xf32>
    %5 = arith.addf %3, %4 : vector<8x128xf32>
    %cst_5 = arith.constant 0.000000e+00 : f32
    %6 = vector.broadcast %cst_5 : f32 to vector<8x128xf32>
    %7 = arith.maximumf %5, %6 : vector<8x128xf32>
    %c0_6 = arith.constant 0 : index
    %c0_7 = arith.constant 0 : index
    %8 = vector.load %arg13[%c0_6, %c0_7] : memref<8x128xf32, #tpu.memory_space<vmem>>, vector<8x128xf32>
    tpu.vector_store %arg13[%c0_6, %c0_7], %7 {strides = array<i32>} : memref<8x128xf32, #tpu.memory_space<vmem>>, vector<8x128xf32>,
    %c0_8 = arith.constant 0 : index
    %c0_9 = arith.constant 0 : index
    %9 = vector.load %arg13[%c0_8, %c0_9] : memref<8x128xf32, #tpu.memory_space<vmem>>, vector<8x128xf32>
    %c0_10 = arith.constant 0 : index
    %c0_11 = arith.constant 0 : index
    %10 = vector.load %arg4[%c0_10, %c0_11] : memref<128x128xf32, #tpu.memory_space<vmem>>, vector<128x128xf32>
    %c0_12 = arith.constant 0 : index
    %c0_13 = arith.constant 0 : index
    %11 = vector.load %arg5[%c0_12, %c0_13] : memref<1x128xf32, #tpu.memory_space<vmem>>, vector<1x128xf32>
    %cst_14 = arith.constant dense<0.000000e+00> : vector<8x128xf32>
    %12 = tpu.matmul %9, %10, %cst_14 {dimension_numbers = #tpu.dot_dimension_numbers<[1], [0], [0], [1], [0, 0, 1, 1], [], []>} : vector<8x128xf32>, vector<128x128xf32>, vector<8x128xf32> -> vector<8x128xf32>
    %13 = vector.broadcast %11 : vector<1x128xf32> to vector<8x128xf32>
    %14 = arith.addf %12, %13 : vector<8x128xf32>
    %cst_15 = arith.constant 0.000000e+00 : f32
    %15 = vector.broadcast %cst_15 : f32 to vector<8x128xf32>
    %16 = arith.maximumf %14, %15 : vector<8x128xf32>
    %c0_16 = arith.constant 0 : index
    %c0_17 = arith.constant 0 : index
    %17 = vector.load %arg13[%c0_16, %c0_17] : memref<8x128xf32, #tpu.memory_space<vmem>>, vector<8x128xf32>
    tpu.vector_store %arg13[%c0_16, %c0_17], %16 {strides = array<i32>} : memref<8x128xf32, #tpu.memory_space<vmem>>, vector<8x128xf32>,
    %c0_18 = arith.constant 0 : index
    %c0_19 = arith.constant 0 : index
    %18 = vector.load %arg13[%c0_18, %c0_19] : memref<8x128xf32, #tpu.memory_space<vmem>>, vector<8x128xf32>
    %c0_20 = arith.constant 0 : index
    %c0_21 = arith.constant 0 : index
    %19 = vector.load %arg6[%c0_20, %c0_21] : memref<128x128xf32, #tpu.memory_space<vmem>>, vector<128x128xf32>
    %c0_22 = arith.constant 0 : index
    %c0_23 = arith.constant 0 : index
    %20 = vector.load %arg7[%c0_22, %c0_23] : memref<1x128xf32, #tpu.memory_space<vmem>>, vector<1x128xf32>
    %cst_24 = arith.constant dense<0.000000e+00> : vector<8x128xf32>
    %21 = tpu.matmul %18, %19, %cst_24 {dimension_numbers = #tpu.dot_dimension_numbers<[1], [0], [0], [1], [0, 0, 1, 1], [], []>} : vector<8x128xf32>, vector<128x128xf32>, vector<8x128xf32> -> vector<8x128xf32>
    %22 = vector.broadcast %20 : vector<1x128xf32> to vector<8x128xf32>
    %23 = arith.addf %21, %22 : vector<8x128xf32>
    %cst_25 = arith.constant 0.000000e+00 : f32
    %24 = vector.broadcast %cst_25 : f32 to vector<8x128xf32>
    %25 = arith.maximumf %23, %24 : vector<8x128xf32>
    %c0_26 = arith.constant 0 : index
    %c0_27 = arith.constant 0 : index
    %26 = vector.load %arg13[%c0_26, %c0_27] : memref<8x128xf32, #tpu.memory_space<vmem>>, vector<8x128xf32>
    tpu.vector_store %arg13[%c0_26, %c0_27], %25 {strides = array<i32>} : memref<8x128xf32, #tpu.memory_space<vmem>>, vector<8x128xf32>,
    %c0_28 = arith.constant 0 : index
    %c0_29 = arith.constant 0 : index
    %27 = vector.load %arg13[%c0_28, %c0_29] : memref<8x128xf32, #tpu.memory_space<vmem>>, vector<8x128xf32>
    %c0_30 = arith.constant 0 : index
    %c0_31 = arith.constant 0 : index
    %28 = vector.load %arg8[%c0_30, %c0_31] : memref<128x128xf32, #tpu.memory_space<vmem>>, vector<128x128xf32>
    %c0_32 = arith.constant 0 : index
    %c0_33 = arith.constant 0 : index
    %29 = vector.load %arg9[%c0_32, %c0_33] : memref<1x128xf32, #tpu.memory_space<vmem>>, vector<1x128xf32>
    %cst_34 = arith.constant dense<0.000000e+00> : vector<8x128xf32>
    %30 = tpu.matmul %27, %28, %cst_34 {dimension_numbers = #tpu.dot_dimension_numbers<[1], [0], [0], [1], [0, 0, 1, 1], [], []>} : vector<8x128xf32>, vector<128x128xf32>, vector<8x128xf32> -> vector<8x128xf32>
    %31 = vector.broadcast %29 : vector<1x128xf32> to vector<8x128xf32>
    %32 = arith.addf %30, %31 : vector<8x128xf32>
    %cst_35 = arith.constant 0.000000e+00 : f32
    %33 = vector.broadcast %cst_35 : f32 to vector<8x128xf32>
    %34 = arith.maximumf %32, %33 : vector<8x128xf32>
    %c0_36 = arith.constant 0 : index
    %c0_37 = arith.constant 0 : index
    %35 = vector.load %arg13[%c0_36, %c0_37] : memref<8x128xf32, #tpu.memory_space<vmem>>, vector<8x128xf32>
    tpu.vector_store %arg13[%c0_36, %c0_37], %34 {strides = array<i32>} : memref<8x128xf32, #tpu.memory_space<vmem>>, vector<8x128xf32>,
    %c0_38 = arith.constant 0 : index
    %c0_39 = arith.constant 0 : index
    %36 = vector.load %arg13[%c0_38, %c0_39] : memref<8x128xf32, #tpu.memory_space<vmem>>, vector<8x128xf32>
    %c0_40 = arith.constant 0 : index
    %c0_41 = arith.constant 0 : index
    %37 = vector.load %arg10[%c0_40, %c0_41] : memref<128x128xf32, #tpu.memory_space<vmem>>, vector<128x128xf32>
    %c0_42 = arith.constant 0 : index
    %c0_43 = arith.constant 0 : index
    %38 = vector.load %arg11[%c0_42, %c0_43] : memref<1x128xf32, #tpu.memory_space<vmem>>, vector<1x128xf32>
    %cst_44 = arith.constant dense<0.000000e+00> : vector<8x128xf32>
    %39 = tpu.matmul %36, %37, %cst_44 {dimension_numbers = #tpu.dot_dimension_numbers<[1], [0], [0], [1], [0, 0, 1, 1], [], []>} : vector<8x128xf32>, vector<128x128xf32>, vector<8x128xf32> -> vector<8x128xf32>
    %40 = vector.broadcast %38 : vector<1x128xf32> to vector<8x128xf32>
    %41 = arith.addf %39, %40 : vector<8x128xf32>
    %c0_45 = arith.constant 0 : index
    %c0_46 = arith.constant 0 : index
    %42 = vector.load %arg12[%c0_45, %c0_46] : memref<8x128xf32, #tpu.memory_space<vmem>>, vector<8x128xf32>
    tpu.vector_store %arg12[%c0_45, %c0_46], %41 {strides = array<i32>} : memref<8x128xf32, #tpu.memory_space<vmem>>, vector<8x128xf32>,
    return
  }
  func.func @transform_0(%arg0: i32) -> (i32, i32) {
    %c0_i32 = arith.constant 0 : i32
    %c0_i32_0 = arith.constant 0 : i32
    return %arg0, %c0_i32 : i32, i32
  }
  func.func @transform_1(%arg0: i32) -> (i32, i32) {
    %c0_i32 = arith.constant 0 : i32
    %c0_i32_0 = arith.constant 0 : i32
    %c0_i32_1 = arith.constant 0 : i32
    return %c0_i32, %c0_i32_0 : i32, i32
  }
  func.func @transform_2(%arg0: i32) -> (i32, i32) {
    %c0_i32 = arith.constant 0 : i32
    %c0_i32_0 = arith.constant 0 : i32
    %c0_i32_1 = arith.constant 0 : i32
    return %c0_i32, %c0_i32_0 : i32, i32
  }
  func.func @transform_3(%arg0: i32) -> (i32, i32) {
    %c0_i32 = arith.constant 0 : i32
    %c0_i32_0 = arith.constant 0 : i32
    %c0_i32_1 = arith.constant 0 : i32
    return %c0_i32, %c0_i32_0 : i32, i32
  }
  func.func @transform_4(%arg0: i32) -> (i32, i32) {
    %c0_i32 = arith.constant 0 : i32
    %c0_i32_0 = arith.constant 0 : i32
    %c0_i32_1 = arith.constant 0 : i32
    return %c0_i32, %c0_i32_0 : i32, i32
  }
  func.func @transform_5(%arg0: i32) -> (i32, i32) {
    %c0_i32 = arith.constant 0 : i32
    %c0_i32_0 = arith.constant 0 : i32
    %c0_i32_1 = arith.constant 0 : i32
    return %c0_i32, %c0_i32_0 : i32, i32
  }
  func.func @transform_6(%arg0: i32) -> (i32, i32) {
    %c0_i32 = arith.constant 0 : i32
    %c0_i32_0 = arith.constant 0 : i32
    %c0_i32_1 = arith.constant 0 : i32
    return %c0_i32, %c0_i32_0 : i32, i32
  }
  func.func @transform_7(%arg0: i32) -> (i32, i32) {
    %c0_i32 = arith.constant 0 : i32
    %c0_i32_0 = arith.constant 0 : i32
    %c0_i32_1 = arith.constant 0 : i32
    return %c0_i32, %c0_i32_0 : i32, i32
  }
  func.func @transform_8(%arg0: i32) -> (i32, i32) {
    %c0_i32 = arith.constant 0 : i32
    %c0_i32_0 = arith.constant 0 : i32
    %c0_i32_1 = arith.constant 0 : i32
    return %c0_i32, %c0_i32_0 : i32, i32
  }
  func.func @transform_9(%arg0: i32) -> (i32, i32) {
    %c0_i32 = arith.constant 0 : i32
    %c0_i32_0 = arith.constant 0 : i32
    %c0_i32_1 = arith.constant 0 : i32
    return %c0_i32, %c0_i32_0 : i32, i32
  }
  func.func @transform_10(%arg0: i32) -> (i32, i32) {
    %c0_i32 = arith.constant 0 : i32
    %c0_i32_0 = arith.constant 0 : i32
    %c0_i32_1 = arith.constant 0 : i32
    return %c0_i32, %c0_i32_0 : i32, i32
  }
  func.func @transform_11(%arg0: i32) -> (i32, i32) {
    %c0_i32 = arith.constant 0 : i32
    %c0_i32_0 = arith.constant 0 : i32
    return %arg0, %c0_i32 : i32, i32
  }
}

</mosaic_0001>

<bundles_post_ra>
// kernel: tpu_custom_call.1
= control target key start
LH: loop header
LB: loop body
LE: loop exit
PB: predicated region body
PF: predicated region fallthrough
CT: control target
= control target key end

     0   :  { %16 = vsyncpa [#allocation4], 0  ;;  %s1254_s0 = inlined_call_operand.hbm [shape: f32[8,128], index: 0, kind: input, shape index: {}]   ;;  %s1255_s1 = inlined_call_operand.hbm [shape: f32[128,128], index: 1, kind: input, shape index: {}]   ;;  %s1256_s2 = inlined_call_operand.vmem [shape: f32[1,128], index: 2, kind: input, shape index: {}]   ;;  %s1257_s3 = inlined_call_operand.hbm [shape: f32[128,128], index: 3, kind: input, shape index: {}]   ;;  %s1258_s4 = inlined_call_operand.vmem [shape: f32[1,128], index: 4, kind: input, shape index: {}]   ;;  %s1259_s5 = inlined_call_operand.hbm [shape: f32[128,128], index: 5, kind: input, shape index: {}]   ;;  %s1260_s6 = inlined_call_operand.vmem [shape: f32[1,128], index: 6, kind: input, shape index: {}]   ;;  %s1261_s7 = inlined_call_operand.hbm [shape: f32[128,128], index: 7, kind: input, shape index: {}]   ;;  %s1262_s8 = inlined_call_operand.vmem [shape: f32[1,128], index: 8, kind: input, shape index: {}]   ;;  %s1263_s9 = inlined_call_operand.hbm [shape: f32[128,128], index: 9, kind: input, shape index: {}]   ;;  %s1264_s10 = inlined_call_operand.vmem [shape: f32[1,128], index: 10, kind: input, shape index: {}]   ;;  %s1265_s11 = inlined_call_operand.hbm [shape: f32[8,128], index: 11, kind: output, shape index: {}]  }
   0x1   :  { %17 = vsyncpa [#allocation7], 0 }
   0x2   :  { %18 = vsyncpa [#allocation10], 0 }
   0x3   :  { %19 = vsyncpa [#allocation13], 0 }
   0x4   :  { %20 = vsyncpa [#allocation5], 0  ;;  %s1042_s17 = smov [#allocation6]  }
   0x5   :  { %s36_s18 = sshll.u32 %s1042_s17, 4  ;;  %s37_s18 = int_to_ptr.vmem [resolvable:$true] %s36_s18 }
   0x6   :  { %s900_s19 = scalar_lea.vmem %s37_s18, 2048  ;;  %p905_p1 = scmp.lt.s32.totalorder %s37_s18, %s37_s18 }
   0x7   :  { %p901_p0 = scmp.ne.s32.totalorder %s37_s18, %s900_s19  ;;  %p906_p2 = scmp.lt.s32.totalorder %s900_s19, %s900_s19 }
   0x9   :  { %p907_p3 = por %p906_p2, %p905_p1 }
   0xb   :  { %p908_p4 = pnand %p907_p3, %p901_p0 }
   0xd   :  { %911 = shalt.err (!%p908_p4)
}
   0xe   :  { %s1043_s20 = smov 128   ;;  %s1044_s21 = smov 8  }
   0xf   :  { %42 = dma.hbm_to_vmem [thread:$0]  %s1255_s1, 2048, %s37_s18, [#allocation7], %s1043_s20, %s1043_s20, %s1044_s21  }
  0x10   :  { %s1045_s24 = smov [#allocation9]   ;;  %s1046_s26 = smov [#allocation3]  }
  0x11   :  { %s64_s25 = sshll.u32 %s1045_s24, 4  ;;  %s27_s27 = sshll.u32 %s1046_s26, 4  ;;  %s65_s25 = int_to_ptr.vmem [resolvable:$true] %s64_s25  ;;  %s28_s27 = int_to_ptr.vmem [resolvable:$true] %s27_s27 }
  0x12   :  { %s920_s28 = scalar_lea.vmem %s65_s25, 2048  ;;  %p925_p6 = scmp.lt.s32.totalorder %s65_s25, %s65_s25 }
  0x13   :  { %p921_p5 = scmp.ne.s32.totalorder %s65_s25, %s920_s28  ;;  %p926_p7 = scmp.lt.s32.totalorder %s920_s28, %s920_s28 }
  0x15   :  { %p927_p8 = por %p926_p7, %p925_p6 }
  0x17   :  { %p928_p9 = pnand %p927_p8, %p921_p5 }
  0x19   :  { %931 = shalt.err (!%p928_p9)
}
  0x1a   :  { %70 = dma.hbm_to_vmem [thread:$0]  %s1259_s5, 2048, %s65_s25, [#allocation10], %s1043_s20, %s1043_s20, %s1044_s21  }
  0x1b   :  { %s940_s1 = scalar_lea.vmem %s28_s27, 128  ;;  %p945_p11 = scmp.lt.s32.totalorder %s28_s27, %s28_s27 }
  0x1c   :  { %p941_p10 = scmp.ne.s32.totalorder %s28_s27, %s940_s1  ;;  %p946_p12 = scmp.lt.s32.totalorder %s940_s1, %s940_s1 }
  0x1e   :  { %p947_p13 = por %p946_p12, %p945_p11 }
  0x20   :  { %p948_p0 = pnand %p947_p13, %p941_p10 }
  0x22   :  { %951 = shalt.err (!%p948_p0)
}
  0x23   :  { %30 = dma.hbm_to_vmem [thread:$0]  %s1254_s0, 128, %s28_s27, [#allocation4]  }
  0x24   :  { %s1047_s14 = smov [#allocation8]   ;;  %s1048_s16 = smov [#allocation11]  }
  0x25   :  { %s50_s15 = sshll.u32 %s1047_s14, 4  ;;  %s78_s17 = sshll.u32 %s1048_s16, 4  ;;  %s51_s15 = int_to_ptr.vmem [resolvable:$true] %s50_s15  ;;  %s79_s17 = int_to_ptr.vmem [resolvable:$true] %s78_s17 }
  0x26   :  { %s960_s18 = scalar_lea.vmem %s51_s15, 2048  ;;  %p965_p2 = scmp.lt.s32.totalorder %s51_s15, %s51_s15 }
  0x27   :  { %p961_p1 = scmp.ne.s32.totalorder %s51_s15, %s960_s18  ;;  %p966_p3 = scmp.lt.s32.totalorder %s960_s18, %s960_s18 }
  0x29   :  { %p967_p4 = por %p966_p3, %p965_p2 }
  0x2b   :  { %p968_p5 = pnand %p967_p4, %p961_p1 }
  0x2d   :  { %971 = shalt.err (!%p968_p5)
}
  0x2e   :  { %56 = dma.hbm_to_vmem [thread:$0]  %s1257_s3, 2048, %s51_s15, [#allocation7], %s1043_s20, %s1043_s20, %s1044_s21  }
  0x2f   :  { %s980_s0 = scalar_lea.vmem %s79_s17, 2048  ;;  %p985_p7 = scmp.lt.s32.totalorder %s79_s17, %s79_s17 }
  0x30   :  { %p981_p6 = scmp.ne.s32.totalorder %s79_s17, %s980_s0  ;;  %p986_p8 = scmp.lt.s32.totalorder %s980_s0, %s980_s0 }
  0x32   :  { %p987_p9 = por %p986_p8, %p985_p7 }
  0x34   :  { %p988_p10 = pnand %p987_p9, %p981_p6 }
  0x36   :  { %991 = shalt.err (!%p988_p10)
}
  0x37   :  { %84 = dma.hbm_to_vmem [thread:$0]  %s1261_s7, 2048, %s79_s17, [#allocation10], %s1043_s20, %s1043_s20, %s1044_s21  }
  0x38   :  { %s1049_s24 = smov [#allocation12]  }
  0x39   :  { %s92_s25 = sshll.u32 %s1049_s24, 4  ;;  %s93_s25 = int_to_ptr.vmem [resolvable:$true] %s92_s25 }
  0x3a   :  { %s1000_s26 = scalar_lea.vmem %s93_s25, 2048  ;;  %p1005_p12 = scmp.lt.s32.totalorder %s93_s25, %s93_s25 }
  0x3b   :  { %p1001_p11 = scmp.ne.s32.totalorder %s93_s25, %s1000_s26  ;;  %p1006_p13 = scmp.lt.s32.totalorder %s1000_s26, %s1000_s26 }
  0x3d   :  { %p1007_p0 = por %p1006_p13, %p1005_p12 }
  0x3f   :  { %p1008_p1 = pnand %p1007_p0, %p1001_p11 }
  0x41   :  { %1011 = shalt.err (!%p1008_p1)
}
  0x42   :  { %98 = dma.hbm_to_vmem [thread:$0]  %s1263_s9, 2048, %s93_s25, [#allocation13], %s1043_s20, %s1043_s20, %s1044_s21  }
  0x43   :  { %1032 = dma.done.wait [#allocation4], 128  }
  0x44   :  { %1033 = vsyncadd [#allocation4], 4294967168 }
  0x45   :  { %1034 = dma.done.wait [#allocation7], 4096  }
  0x46   :  { %1035 = vsyncadd [#allocation7], 4294963200 }
  0x47   :  { %1036 = dma.done.wait [#allocation10], 4096  }
  0x48   :  { %1037 = vsyncadd [#allocation10], 4294963200 }
  0x49   :  { %1038 = dma.done.wait [#allocation13], 2048  }
  0x4a   :  { %1039 = vsyncadd [#allocation13], 4294965248  ;;  %v1050_v0 = vmov 0.0   ;;  %vm1051_vm0 = vmmov 0   ;;  %v135_v1 = vld [vmem:[#allocation6 + $0x78] sm:$0xff]  ;;  %v134_v2 = vld [vmem:[#allocation6 + $0x70] sm:$0xff] }
  0x4b   :  { %706 = vmatprep.subr.mxu0 %v1050_v0  ;;  %738 = vmatprep.mubr.msk.f32.mxu0 %vm1051_vm0, %v1050_v0  ;;  %v133_v3 = vld [vmem:[#allocation6 + $0x68] sm:$0xff]  ;;  %v132_v4 = vld [vmem:[#allocation6 + $0x60] sm:$0xff]  ;;  %v231_v5 = vld [vmem:[#allocation8 + $0x78] sm:$0xff]  ;;  %s1052_s1 = smov [#allocation14]  }
  0x4c   :  { %741 = vmatprep.subr.mxu1 %v1050_v0  ;;  %773 = vmatprep.mubr.msk.f32.mxu1 %vm1051_vm0, %v1050_v0  ;;  %v131_v6 = vld [vmem:[#allocation6 + $0x58] sm:$0xff]  ;;  %v230_v7 = vld [vmem:[#allocation8 + $0x70] sm:$0xff]  ;;  %v229_v8 = vld [vmem:[#allocation8 + $0x68] sm:$0xff]  ;;  %s604_s12 = sshll.u32 %s1052_s1, 4  ;;  %s605_s12 = int_to_ptr.vmem [resolvable:$true] %s604_s12 }
  0x4d   :  { %707 = vmatpush3.msra.mxu0 %v135_v1  ;;  %742 = vmatpush3.msra.mxu1 %v231_v5  ;;  %v130_v9 = vld [vmem:[#allocation6 + $0x50] sm:$0xff]  ;;  %v228_v10 = vld [vmem:[#allocation8 + $0x60] sm:$0xff]  ;;  %v129_v11 = vld [vmem:[#allocation6 + $0x48] sm:$0xff]  ;;  %s1012_s13 = scalar_lea.vmem %s605_s12, 128  ;;  %p1017_p3 = scmp.lt.s32.totalorder %s605_s12, %s605_s12 }
  0x4e   :  { %708 = vmatprep.subr.mxu0 %v1050_v0  ;;  %743 = vmatprep.subr.mxu1 %v1050_v0  ;;  %v227_v12 = vld [vmem:[#allocation8 + $0x58] sm:$0xff]  ;;  %v128_v13 = vld [vmem:[#allocation6 + $0x40] sm:$0xff]  ;;  %v226_v14 = vld [vmem:[#allocation8 + $0x50] sm:$0xff]  ;;  %p1013_p2 = scmp.ne.s32.totalorder %s605_s12, %s1012_s13  ;;  %p1018_p4 = scmp.lt.s32.totalorder %s1012_s13, %s1012_s13 }
  0x4f   :  { %709 = vmatpush3.msra.mxu0 %v134_v2  ;;  %744 = vmatpush3.msra.mxu1 %v230_v7  ;;  %v127_v15 = vld [vmem:[#allocation6 + $0x38] sm:$0xff]  ;;  %v225_v16 = vld [vmem:[#allocation8 + $0x48] sm:$0xff]  ;;  %v126_v17 = vld [vmem:[#allocation6 + $0x30] sm:$0xff] }
  0x50   :  { %710 = vmatprep.subr.mxu0 %v1050_v0  ;;  %745 = vmatprep.subr.mxu1 %v1050_v0  ;;  %v224_v18 = vld [vmem:[#allocation8 + $0x40] sm:$0xff]  ;;  %v125_v19 = vld [vmem:[#allocation6 + $0x28] sm:$0xff]  ;;  %v223_v20 = vld [vmem:[#allocation8 + $0x38] sm:$0xff]  ;;  %p1019_p5 = por %p1018_p4, %p1017_p3 }
  0x51   :  { %711 = vmatpush3.msra.mxu0 %v133_v3  ;;  %746 = vmatpush3.msra.mxu1 %v229_v8  ;;  %v124_v21 = vld [vmem:[#allocation6 + $0x20] sm:$0xff]  ;;  %v222_v22 = vld [vmem:[#allocation8 + $0x30] sm:$0xff]  ;;  %v123_v23 = vld [vmem:[#allocation6 + $0x18] sm:$0xff] }
  0x52   :  { %712 = vmatprep.subr.mxu0 %v1050_v0  ;;  %747 = vmatprep.subr.mxu1 %v1050_v0  ;;  %v221_v24 = vld [vmem:[#allocation8 + $0x28] sm:$0xff]  ;;  %v122_v25 = vld [vmem:[#allocation6 + $0x10] sm:$0xff]  ;;  %v220_v26 = vld [vmem:[#allocation8 + $0x20] sm:$0xff]  ;;  %p1020_p6 = pnand %p1019_p5, %p1013_p2 }
  0x53   :  { %713 = vmatpush3.msra.mxu0 %v132_v4  ;;  %748 = vmatpush3.msra.mxu1 %v228_v10  ;;  %v121_v27 = vld [vmem:[#allocation6 + $0x8] sm:$0xff]  ;;  %v219_v28 = vld [vmem:[#allocation8 + $0x18] sm:$0xff]  ;;  %v120_v29 = vld [vmem:[#allocation6] sm:$0xff] }
  0x54   :  { %714 = vmatprep.subr.mxu0 %v1050_v0  ;;  %749 = vmatprep.subr.mxu1 %v1050_v0  ;;  %v119_v30 = vld [vmem:[#allocation3] sm:$0xff]  ;;  %v218_v31 = vld [vmem:[#allocation8 + $0x10] sm:$0xff]  ;;  %v217_v32 = vld [vmem:[#allocation8 + $0x8] sm:$0xff] }
  0x55   :  { %715 = vmatpush3.msra.mxu0 %v131_v6  ;;  %750 = vmatpush3.msra.mxu1 %v227_v12  ;;  %v216_v33 = vld [vmem:[#allocation8] sm:$0xff]  ;;  %v327_v34 = vld [vmem:[#allocation9 + $0x78] sm:$0xff]  ;;  %v326_v35 = vld [vmem:[#allocation9 + $0x70] sm:$0xff] }
  0x56   :  { %716 = vmatprep.subr.mxu0 %v1050_v0  ;;  %751 = vmatprep.subr.mxu1 %v1050_v0  ;;  %v325_v36 = vld [vmem:[#allocation9 + $0x68] sm:$0xff]  ;;  %v324_v37 = vld [vmem:[#allocation9 + $0x60] sm:$0xff]  ;;  %v323_v38 = vld [vmem:[#allocation9 + $0x58] sm:$0xff] }
  0x57   :  { %717 = vmatpush3.msra.mxu0 %v130_v9  ;;  %752 = vmatpush3.msra.mxu1 %v226_v14  ;;  %v322_v39 = vld [vmem:[#allocation9 + $0x50] sm:$0xff]  ;;  %v321_v40 = vld [vmem:[#allocation9 + $0x48] sm:$0xff]  ;;  %v320_v41 = vld [vmem:[#allocation9 + $0x40] sm:$0xff] }
  0x58   :  { %718 = vmatprep.subr.mxu0 %v1050_v0  ;;  %753 = vmatprep.subr.mxu1 %v1050_v0  ;;  %v319_v42 = vld [vmem:[#allocation9 + $0x38] sm:$0xff]  ;;  %v318_v43 = vld [vmem:[#allocation9 + $0x30] sm:$0xff]  ;;  %v317_v44 = vld [vmem:[#allocation9 + $0x28] sm:$0xff] }
  0x59   :  { %719 = vmatpush3.msra.mxu0 %v129_v11  ;;  %754 = vmatpush3.msra.mxu1 %v225_v16  ;;  %v316_v45 = vld [vmem:[#allocation9 + $0x20] sm:$0xff]  ;;  %v315_v46 = vld [vmem:[#allocation9 + $0x18] sm:$0xff]  ;;  %v314_v52 = vld [vmem:[#allocation9 + $0x10] sm:$0xff] }
  0x5a   :  { %720 = vmatprep.subr.mxu0 %v1050_v0  ;;  %755 = vmatprep.subr.mxu1 %v1050_v0  ;;  %v616_v47 = vld [vmem:[%s1256_s2] ss:$0 sm:$0xff]  ;;  %v313_v53 = vld [vmem:[#allocation9 + $0x8] sm:$0xff]  ;;  %v312_v54 = vld [vmem:[#allocation9] sm:$0xff] }
  0x5b   :  { %721 = vmatpush3.msra.mxu0 %v128_v13  ;;  %756 = vmatpush3.msra.mxu1 %v224_v18  ;;  %v423_v55 = vld [vmem:[#allocation11 + $0x78] sm:$0xff]  ;;  %v422_v56 = vld [vmem:[#allocation11 + $0x70] sm:$0xff]  ;;  %v421_v57 = vld [vmem:[#allocation11 + $0x68] sm:$0xff] }
  0x5c   :  { %722 = vmatprep.subr.mxu0 %v1050_v0  ;;  %757 = vmatprep.subr.mxu1 %v1050_v0  ;;  %v420_v58 = vld [vmem:[#allocation11 + $0x60] sm:$0xff]  ;;  %v419_v59 = vld [vmem:[#allocation11 + $0x58] sm:$0xff]  ;;  %v418_v60 = vld [vmem:[#allocation11 + $0x50] sm:$0xff] }
  0x5d   :  { %723 = vmatpush3.msra.mxu0 %v127_v15  ;;  %758 = vmatpush3.msra.mxu1 %v223_v20  ;;  %v417_v61 = vld [vmem:[#allocation11 + $0x48] sm:$0xff]  ;;  %v416_v62 = vld [vmem:[#allocation11 + $0x40] sm:$0xff]  ;;  %v415_v63 = vld [vmem:[#allocation11 + $0x38] sm:$0xff] }
  0x5e   :  { %724 = vmatprep.subr.mxu0 %v1050_v0  ;;  %759 = vmatprep.subr.mxu1 %v1050_v0  ;;  %v414_v1 = vld [vmem:[#allocation11 + $0x30] sm:$0xff]  ;;  %v413_v2 = vld [vmem:[#allocation11 + $0x28] sm:$0xff]  ;;  %v412_v3 = vld [vmem:[#allocation11 + $0x20] sm:$0xff] }
  0x5f   :  { %725 = vmatpush3.msra.mxu0 %v126_v17  ;;  %760 = vmatpush3.msra.mxu1 %v222_v22  ;;  %v411_v4 = vld [vmem:[#allocation11 + $0x18] sm:$0xff]  ;;  %v410_v10 = vld [vmem:[#allocation11 + $0x10] sm:$0xff]  ;;  %v409_v11 = vld [vmem:[#allocation11 + $0x8] sm:$0xff] }
  0x60   :  { %726 = vmatprep.subr.mxu0 %v1050_v0  ;;  %761 = vmatprep.subr.mxu1 %v1050_v0  ;;  %v617_v5 = vld [vmem:[%s1258_s4] ss:$0 sm:$0xff]  ;;  %v408_v12 = vld [vmem:[#allocation11] sm:$0xff]  ;;  %v518_v14 = vld [vmem:[#allocation12 + $0x70] sm:$0xff] }
  0x61   :  { %727 = vmatpush3.msra.mxu0 %v125_v19  ;;  %762 = vmatpush3.msra.mxu1 %v221_v24  ;;  %v519_v13 = vld [vmem:[#allocation12 + $0x78] sm:$0xff]  ;;  %v517_v15 = vld [vmem:[#allocation12 + $0x68] sm:$0xff]  ;;  %v516_v16 = vld [vmem:[#allocation12 + $0x60] sm:$0xff] }
  0x62   :  { %728 = vmatprep.subr.mxu0 %v1050_v0  ;;  %763 = vmatprep.subr.mxu1 %v1050_v0  ;;  %v515_v17 = vld [vmem:[#allocation12 + $0x58] sm:$0xff]  ;;  %v514_v18 = vld [vmem:[#allocation12 + $0x50] sm:$0xff]  ;;  %v513_v19 = vld [vmem:[#allocation12 + $0x48] sm:$0xff] }
  0x63   :  { %729 = vmatpush3.msra.mxu0 %v124_v21  ;;  %764 = vmatpush3.msra.mxu1 %v220_v26  ;;  %v512_v20 = vld [vmem:[#allocation12 + $0x40] sm:$0xff]  ;;  %v511_v21 = vld [vmem:[#allocation12 + $0x38] sm:$0xff]  ;;  %v510_v22 = vld [vmem:[#allocation12 + $0x30] sm:$0xff] }
  0x64   :  { %730 = vmatprep.subr.mxu0 %v1050_v0  ;;  %765 = vmatprep.subr.mxu1 %v1050_v0  ;;  %v508_v24 = vld [vmem:[#allocation12 + $0x20] sm:$0xff]  ;;  %v618_v26 = vld [vmem:[%s1260_s6] ss:$0 sm:$0xff] }
  0x65   :  { %731 = vmatpush3.msra.mxu0 %v123_v23  ;;  %766 = vmatpush3.msra.mxu1 %v219_v28  ;;  %v509_v23 = vld [vmem:[#allocation12 + $0x28] sm:$0xff] }
  0x66   :  { %732 = vmatprep.subr.mxu0 %v1050_v0  ;;  %767 = vmatprep.subr.mxu1 %v1050_v0 }
  0x67   :  { %733 = vmatpush3.msra.mxu0 %v122_v25  ;;  %768 = vmatpush3.msra.mxu1 %v218_v31  ;;  %v507_v25 = vld [vmem:[#allocation12 + $0x18] sm:$0xff]  ;;  %v506_v31 = vld [vmem:[#allocation12 + $0x10] sm:$0xff] }
  0x68   :  { %734 = vmatprep.subr.mxu0 %v1050_v0  ;;  %769 = vmatprep.subr.mxu1 %v1050_v0 }
  0x69   :  { %735 = vmatpush3.msra.mxu0 %v121_v27  ;;  %770 = vmatpush3.msra.mxu1 %v217_v32  ;;  %v505_v32 = vld [vmem:[#allocation12 + $0x8] sm:$0xff] }
  0x6a   :  { %736 = vmatprep.subr.mxu0 %v1050_v0  ;;  %771 = vmatprep.subr.mxu1 %v1050_v0 }
  0x6b   :  { %737 = vmatpush3.msra.mxu0 %v120_v29  ;;  %772 = vmatpush3.msra.mxu1 %v216_v33  ;;  %v504_v33 = vld [vmem:[#allocation12] sm:$0xff] }
  0x6c   :  { %739 = vmatmul.mubr.f32.vlgmr.msra.gmra.mxu0 %v119_v30  ;;  %776 = vmatprep.subr.mxu0 %v1050_v0 }
  0x6d   :  { %808 = vmatprep.mubr.msk.f32.mxu0 %vm1051_vm0, %v1050_v0  ;;  %811 = vmatprep.subr.mxu1 %v1050_v0 }
  0x6e   :  { %777 = vmatpush3.msra.mxu0 %v327_v34  ;;  %v619_v34 = vld [vmem:[%s1262_s8] ss:$0 sm:$0xff] }
  0x6f   :  { %778 = vmatprep.subr.mxu0 %v1050_v0 }
  0x70   :  { %779 = vmatpush3.msra.mxu0 %v326_v35 }
  0x71   :  { %780 = vmatprep.subr.mxu0 %v1050_v0 }
  0x72   :  { %781 = vmatpush3.msra.mxu0 %v325_v36 }
  0x73   :  { %782 = vmatprep.subr.mxu0 %v1050_v0 }
  0x74   :  { %783 = vmatpush3.msra.mxu0 %v324_v37 }
  0x75   :  { %784 = vmatprep.subr.mxu0 %v1050_v0 }
  0x76   :  { %785 = vmatpush3.msra.mxu0 %v323_v38 }
  0x77   :  { %786 = vmatprep.subr.mxu0 %v1050_v0 }
  0x78   :  { %787 = vmatpush3.msra.mxu0 %v322_v39  ;;  %v620_v39 = vld [vmem:[%s1264_s10] ss:$0 sm:$0xff] }
  0x79   :  { %788 = vmatprep.subr.mxu0 %v1050_v0 }
  0x7a   :  { %789 = vmatpush3.msra.mxu0 %v321_v40 }
  0x7b   :  { %790 = vmatprep.subr.mxu0 %v1050_v0 }
  0x7c   :  { %791 = vmatpush3.msra.mxu0 %v320_v41 }
  0x7d   :  { %792 = vmatprep.subr.mxu0 %v1050_v0 }
  0x7e   :  { %793 = vmatpush3.msra.mxu0 %v319_v42 }
  0x7f   :  { %794 = vmatprep.subr.mxu0 %v1050_v0 }
  0x80   :  { %795 = vmatpush3.msra.mxu0 %v318_v43 }
  0x81   :  { %796 = vmatprep.subr.mxu0 %v1050_v0 }
  0x82   :  { %797 = vmatpush3.msra.mxu0 %v317_v44 }
  0x83   :  { %798 = vmatprep.subr.mxu0 %v1050_v0 }
  0x84   :  { %799 = vmatpush3.msra.mxu0 %v316_v45 }
  0x85   :  { %800 = vmatprep.subr.mxu0 %v1050_v0 }
  0x86   :  { %801 = vmatpush3.msra.mxu0 %v315_v46 }
  0x87   :  { %802 = vmatprep.subr.mxu0 %v1050_v0 }
  0x88   :  { %803 = vmatpush3.msra.mxu0 %v314_v52 }
  0x89   :  { %804 = vmatprep.subr.mxu0 %v1050_v0 }
  0x8a   :  { %805 = vmatpush3.msra.mxu0 %v313_v53 }
  0x8b   :  { %806 = vmatprep.subr.mxu0 %v1050_v0 }
  0x8c   :  { %807 = vmatpush3.msra.mxu0 %v312_v54 }
  0x8d   :  { %846 = vmatprep.subr.mxu0 %v1050_v0 }
 0x12c   :  { %v209_v48 = vpop.f32.mrf.mxu0 }
 0x12d   :  { %v210_v49 = vadd.f32 %v616_v47, %v209_v48 }
 0x12e   :  { %v740_v50 = vpop.f32.mrf.mxu0 }
 0x12f   :  { %v213_v51 = vmax.f32 %v210_v49, 0.0 }
 0x131   :  { %774 = vmatmul.mubr.f32.vlgmr.msra.gmra.mxu1 %v213_v51 }
 0x132   :  { %843 = vmatprep.mubr.msk.f32.mxu1 %vm1051_vm0, %v1050_v0  ;;  %812 = vmatpush3.msra.mxu1 %v423_v55 }
 0x133   :  { %813 = vmatprep.subr.mxu1 %v1050_v0 }
 0x134   :  { %814 = vmatpush3.msra.mxu1 %v422_v56 }
 0x135   :  { %815 = vmatprep.subr.mxu1 %v1050_v0 }
 0x136   :  { %816 = vmatpush3.msra.mxu1 %v421_v57 }
 0x137   :  { %817 = vmatprep.subr.mxu1 %v1050_v0 }
 0x138   :  { %818 = vmatpush3.msra.mxu1 %v420_v58 }
 0x139   :  { %819 = vmatprep.subr.mxu1 %v1050_v0 }
 0x13a   :  { %820 = vmatpush3.msra.mxu1 %v419_v59 }
 0x13b   :  { %821 = vmatprep.subr.mxu1 %v1050_v0 }
 0x13c   :  { %822 = vmatpush3.msra.mxu1 %v418_v60 }
 0x13d   :  { %823 = vmatprep.subr.mxu1 %v1050_v0 }
 0x13e   :  { %824 = vmatpush3.msra.mxu1 %v417_v61 }
 0x13f   :  { %825 = vmatprep.subr.mxu1 %v1050_v0 }
 0x140   :  { %826 = vmatpush3.msra.mxu1 %v416_v62 }
 0x141   :  { %827 = vmatprep.subr.mxu1 %v1050_v0 }
 0x142   :  { %828 = vmatpush3.msra.mxu1 %v415_v63 }
 0x143   :  { %829 = vmatprep.subr.mxu1 %v1050_v0 }
 0x144   :  { %830 = vmatpush3.msra.mxu1 %v414_v1 }
 0x145   :  { %831 = vmatprep.subr.mxu1 %v1050_v0 }
 0x146   :  { %832 = vmatpush3.msra.mxu1 %v413_v2 }
 0x147   :  { %833 = vmatprep.subr.mxu1 %v1050_v0 }
 0x148   :  { %834 = vmatpush3.msra.mxu1 %v412_v3 }
 0x149   :  { %835 = vmatprep.subr.mxu1 %v1050_v0 }
 0x14a   :  { %836 = vmatpush3.msra.mxu1 %v411_v4 }
 0x14b   :  { %837 = vmatprep.subr.mxu1 %v1050_v0 }
 0x14c   :  { %838 = vmatpush3.msra.mxu1 %v410_v10 }
 0x14d   :  { %839 = vmatprep.subr.mxu1 %v1050_v0 }
 0x14e   :  { %840 = vmatpush3.msra.mxu1 %v409_v11 }
 0x14f   :  { %841 = vmatprep.subr.mxu1 %v1050_v0 }
 0x150   :  { %842 = vmatpush3.msra.mxu1 %v408_v12 }
 0x1f1   :  { %v305_v6 = vpop.f32.mrf.mxu1 }
 0x1f2   :  { %v306_v7 = vadd.f32 %v617_v5, %v305_v6 }
 0x1f3   :  { %v775_v8 = vpop.f32.mrf.mxu1 }
 0x1f4   :  { %v309_v9 = vmax.f32 %v306_v7, 0.0 }
 0x1f6   :  { %809 = vmatmul.mubr.f32.vlgmr.msra.gmra.mxu0 %v309_v9 }
 0x1f7   :  { %878 = vmatprep.mubr.msk.f32.mxu0 %vm1051_vm0, %v1050_v0  ;;  %847 = vmatpush3.msra.mxu0 %v519_v13 }
 0x1f8   :  { %848 = vmatprep.subr.mxu0 %v1050_v0 }
 0x1f9   :  { %849 = vmatpush3.msra.mxu0 %v518_v14 }
 0x1fa   :  { %850 = vmatprep.subr.mxu0 %v1050_v0 }
 0x1fb   :  { %851 = vmatpush3.msra.mxu0 %v517_v15 }
 0x1fc   :  { %852 = vmatprep.subr.mxu0 %v1050_v0 }
 0x1fd   :  { %853 = vmatpush3.msra.mxu0 %v516_v16 }
 0x1fe   :  { %854 = vmatprep.subr.mxu0 %v1050_v0 }
 0x1ff   :  { %855 = vmatpush3.msra.mxu0 %v515_v17 }
 0x200   :  { %856 = vmatprep.subr.mxu0 %v1050_v0 }
 0x201   :  { %857 = vmatpush3.msra.mxu0 %v514_v18 }
 0x202   :  { %858 = vmatprep.subr.mxu0 %v1050_v0 }
 0x203   :  { %859 = vmatpush3.msra.mxu0 %v513_v19 }
 0x204   :  { %860 = vmatprep.subr.mxu0 %v1050_v0 }
 0x205   :  { %861 = vmatpush3.msra.mxu0 %v512_v20 }
 0x206   :  { %862 = vmatprep.subr.mxu0 %v1050_v0 }
 0x207   :  { %863 = vmatpush3.msra.mxu0 %v511_v21 }
 0x208   :  { %864 = vmatprep.subr.mxu0 %v1050_v0 }
 0x209   :  { %865 = vmatpush3.msra.mxu0 %v510_v22 }
 0x20a   :  { %866 = vmatprep.subr.mxu0 %v1050_v0 }
 0x20b   :  { %867 = vmatpush3.msra.mxu0 %v509_v23 }
 0x20c   :  { %868 = vmatprep.subr.mxu0 %v1050_v0 }
 0x20d   :  { %869 = vmatpush3.msra.mxu0 %v508_v24 }
 0x20e   :  { %870 = vmatprep.subr.mxu0 %v1050_v0 }
 0x20f   :  { %871 = vmatpush3.msra.mxu0 %v507_v25 }
 0x210   :  { %872 = vmatprep.subr.mxu0 %v1050_v0 }
 0x211   :  { %873 = vmatpush3.msra.mxu0 %v506_v31 }
 0x212   :  { %874 = vmatprep.subr.mxu0 %v1050_v0 }
 0x213   :  { %875 = vmatpush3.msra.mxu0 %v505_v32 }
 0x214   :  { %876 = vmatprep.subr.mxu0 %v1050_v0 }
 0x215   :  { %877 = vmatpush3.msra.mxu0 %v504_v33 }
 0x2b6   :  { %v401_v27 = vpop.f32.mrf.mxu0 }
 0x2b7   :  { %v402_v28 = vadd.f32 %v618_v26, %v401_v27 }
 0x2b8   :  { %v810_v29 = vpop.f32.mrf.mxu0 }
 0x2b9   :  { %v405_v30 = vmax.f32 %v402_v28, 0.0 }
 0x2bb   :  { %844 = vmatmul.mubr.f32.vlgmr.msra.gmra.mxu1 %v405_v30 }
 0x37b   :  { %v497_v35 = vpop.f32.mrf.mxu1 }
 0x37c   :  { %v498_v36 = vadd.f32 %v619_v34, %v497_v35 }
 0x37d   :  { %v845_v37 = vpop.f32.mrf.mxu1 }
 0x37e   :  { %v501_v38 = vmax.f32 %v498_v36, 0.0 }
 0x380   :  { %879 = vmatmul.mubr.f32.vlgmr.msra.gmra.mxu0 %v501_v38 }
 0x440   :  { %v593_v40 = vpop.f32.mrf.mxu0 }
 0x441   :  { %v594_v41 = vadd.f32 %v620_v39, %v593_v40 }
 0x442   :  { %v880_v0 = vpop.f32.mrf.mxu0 }
 0x443   :  { %597 = vst [vmem:[#allocation14] sm:$0xff] %v594_v41 }
 0x444   :  { %1023 = shalt.err (!%p1020_p6)
}
 0x445   :  { %607 = dma.vmem_to_hbm [thread:$0]  %s605_s12, 128, %s1265_s11, [#allocation5]  }
 0x446   :  { %1040 = dma.done.wait [#allocation5], 128  }
 0x447   :  { %1041 = vsyncadd [#allocation5], 4294967168 }
 0x448   :  { %611 = vsyncpa [#allocation4], 1 }
 0x449   :  { %612 = vsyncpa [#allocation7], 1 }
 0x44a   :  { %613 = vsyncpa [#allocation10], 1 }
 0x44b   :  { %614 = vsyncpa [#allocation13], 1 }
 0x44c   :  { %615 = vsyncpa [#allocation5], 1 }

// kernel: tpu_custom_call.1
= control target key start
LH: loop header
LB: loop body
LE: loop exit
PB: predicated region body
PF: predicated region fallthrough
CT: control target
= control target key end

     0   :  { %16 = vsyncpa [#allocation4], 0  ;;  %s1254_s0 = inlined_call_operand.hbm [shape: f32[8,128], index: 0, kind: input, shape index: {}]   ;;  %s1255_s1 = inlined_call_operand.hbm [shape: f32[128,128], index: 1, kind: input, shape index: {}]   ;;  %s1256_s2 = inlined_call_operand.vmem [shape: f32[1,128], index: 2, kind: input, shape index: {}]   ;;  %s1257_s3 = inlined_call_operand.hbm [shape: f32[128,128], index: 3, kind: input, shape index: {}]   ;;  %s1258_s4 = inlined_call_operand.vmem [shape: f32[1,128], index: 4, kind: input, shape index: {}]   ;;  %s1259_s5 = inlined_call_operand.hbm [shape: f32[128,128], index: 5, kind: input, shape index: {}]   ;;  %s1260_s6 = inlined_call_operand.vmem [shape: f32[1,128], index: 6, kind: input, shape index: {}]   ;;  %s1261_s7 = inlined_call_operand.hbm [shape: f32[128,128], index: 7, kind: input, shape index: {}]   ;;  %s1262_s8 = inlined_call_operand.vmem [shape: f32[1,128], index: 8, kind: input, shape index: {}]   ;;  %s1263_s9 = inlined_call_operand.hbm [shape: f32[128,128], index: 9, kind: input, shape index: {}]   ;;  %s1264_s10 = inlined_call_operand.vmem [shape: f32[1,128], index: 10, kind: input, shape index: {}]   ;;  %s1265_s11 = inlined_call_operand.hbm [shape: f32[8,128], index: 11, kind: output, shape index: {}]  }
   0x1   :  { %17 = vsyncpa [#allocation7], 0 }
   0x2   :  { %18 = vsyncpa [#allocation10], 0 }
   0x3   :  { %19 = vsyncpa [#allocation13], 0 }
   0x4   :  { %20 = vsyncpa [#allocation5], 0  ;;  %s1042_s17 = smov [#allocation6]  }
   0x5   :  { %s36_s18 = sshll.u32 %s1042_s17, 4  ;;  %s37_s18 = int_to_ptr.vmem [resolvable:$true] %s36_s18 }
   0x6   :  { %s900_s19 = scalar_lea.vmem %s37_s18, 2048  ;;  %p905_p1 = scmp.lt.s32.totalorder %s37_s18, %s37_s18 }
   0x7   :  { %p901_p0 = scmp.ne.s32.totalorder %s37_s18, %s900_s19  ;;  %p906_p2 = scmp.lt.s32.totalorder %s900_s19, %s900_s19 }
   0x9   :  { %p907_p3 = por %p906_p2, %p905_p1 }
   0xb   :  { %p908_p4 = pnand %p907_p3, %p901_p0 }
   0xd   :  { %911 = shalt.err (!%p908_p4)
}
   0xe   :  { %s1043_s20 = smov 128   ;;  %s1044_s21 = smov 8  }
   0xf   :  { %42 = dma.hbm_to_vmem [thread:$0]  %s1255_s1, 2048, %s37_s18, [#allocation7], %s1043_s20, %s1043_s20, %s1044_s21  }
  0x10   :  { %s1045_s24 = smov [#allocation9]   ;;  %s1046_s26 = smov [#allocation3]  }
  0x11   :  { %s64_s25 = sshll.u32 %s1045_s24, 4  ;;  %s27_s27 = sshll.u32 %s1046_s26, 4  ;;  %s65_s25 = int_to_ptr.vmem [resolvable:$true] %s64_s25  ;;  %s28_s27 = int_to_ptr.vmem [resolvable:$true] %s27_s27 }
  0x12   :  { %s920_s28 = scalar_lea.vmem %s65_s25, 2048  ;;  %p925_p6 = scmp.lt.s32.totalorder %s65_s25, %s65_s25 }
  0x13   :  { %p921_p5 = scmp.ne.s32.totalorder %s65_s25, %s920_s28  ;;  %p926_p7 = scmp.lt.s32.totalorder %s920_s28, %s920_s28 }
  0x15   :  { %p927_p8 = por %p926_p7, %p925_p6 }
  0x17   :  { %p928_p9 = pnand %p927_p8, %p921_p5 }
  0x19   :  { %931 = shalt.err (!%p928_p9)
}
  0x1a   :  { %70 = dma.hbm_to_vmem [thread:$0]  %s1259_s5, 2048, %s65_s25, [#allocation10], %s1043_s20, %s1043_s20, %s1044_s21  }
  0x1b   :  { %s940_s1 = scalar_lea.vmem %s28_s27, 128  ;;  %p945_p11 = scmp.lt.s32.totalorder %s28_s27, %s28_s27 }
  0x1c   :  { %p941_p10 = scmp.ne.s32.totalorder %s28_s27, %s940_s1  ;;  %p946_p12 = scmp.lt.s32.totalorder %s940_s1, %s940_s1 }
  0x1e   :  { %p947_p13 = por %p946_p12, %p945_p11 }
  0x20   :  { %p948_p0 = pnand %p947_p13, %p941_p10 }
  0x22   :  { %951 = shalt.err (!%p948_p0)
}
  0x23   :  { %30 = dma.hbm_to_vmem [thread:$0]  %s1254_s0, 128, %s28_s27, [#allocation4]  }
  0x24   :  { %s1047_s14 = smov [#allocation8]   ;;  %s1048_s16 = smov [#allocation11]  }
  0x25   :  { %s50_s15 = sshll.u32 %s1047_s14, 4  ;;  %s78_s17 = sshll.u32 %s1048_s16, 4  ;;  %s51_s15 = int_to_ptr.vmem [resolvable:$true] %s50_s15  ;;  %s79_s17 = int_to_ptr.vmem [resolvable:$true] %s78_s17 }
  0x26   :  { %s960_s18 = scalar_lea.vmem %s51_s15, 2048  ;;  %p965_p2 = scmp.lt.s32.totalorder %s51_s15, %s51_s15 }
  0x27   :  { %p961_p1 = scmp.ne.s32.totalorder %s51_s15, %s960_s18  ;;  %p966_p3 = scmp.lt.s32.totalorder %s960_s18, %s960_s18 }
  0x29   :  { %p967_p4 = por %p966_p3, %p965_p2 }
  0x2b   :  { %p968_p5 = pnand %p967_p4, %p961_p1 }
  0x2d   :  { %971 = shalt.err (!%p968_p5)
}
  0x2e   :  { %56 = dma.hbm_to_vmem [thread:$0]  %s1257_s3, 2048, %s51_s15, [#allocation7], %s1043_s20, %s1043_s20, %s1044_s21  }
  0x2f   :  { %s980_s0 = scalar_lea.vmem %s79_s17, 2048  ;;  %p985_p7 = scmp.lt.s32.totalorder %s79_s17, %s79_s17 }
  0x30   :  { %p981_p6 = scmp.ne.s32.totalorder %s79_s17, %s980_s0  ;;  %p986_p8 = scmp.lt.s32.totalorder %s980_s0, %s980_s0 }
  0x32   :  { %p987_p9 = por %p986_p8, %p985_p7 }
  0x34   :  { %p988_p10 = pnand %p987_p9, %p981_p6 }
  0x36   :  { %991 = shalt.err (!%p988_p10)
}
  0x37   :  { %84 = dma.hbm_to_vmem [thread:$0]  %s1261_s7, 2048, %s79_s17, [#allocation10], %s1043_s20, %s1043_s20, %s1044_s21  }
  0x38   :  { %s1049_s24 = smov [#allocation12]  }
  0x39   :  { %s92_s25 = sshll.u32 %s1049_s24, 4  ;;  %s93_s25 = int_to_ptr.vmem [resolvable:$true] %s92_s25 }
  0x3a   :  { %s1000_s26 = scalar_lea.vmem %s93_s25, 2048  ;;  %p1005_p12 = scmp.lt.s32.totalorder %s93_s25, %s93_s25 }
  0x3b   :  { %p1001_p11 = scmp.ne.s32.totalorder %s93_s25, %s1000_s26  ;;  %p1006_p13 = scmp.lt.s32.totalorder %s1000_s26, %s1000_s26 }
  0x3d   :  { %p1007_p0 = por %p1006_p13, %p1005_p12 }
  0x3f   :  { %p1008_p1 = pnand %p1007_p0, %p1001_p11 }
  0x41   :  { %1011 = shalt.err (!%p1008_p1)
}
  0x42   :  { %98 = dma.hbm_to_vmem [thread:$0]  %s1263_s9, 2048, %s93_s25, [#allocation13], %s1043_s20, %s1043_s20, %s1044_s21  }
  0x43   :  { %1032 = dma.done.wait [#allocation4], 128  }
  0x44   :  { %1033 = vsyncadd [#allocation4], 4294967168 }
  0x45   :  { %1034 = dma.done.wait [#allocation7], 4096  }
  0x46   :  { %1035 = vsyncadd [#allocation7], 4294963200 }
  0x47   :  { %1036 = dma.done.wait [#allocation10], 4096  }
  0x48   :  { %1037 = vsyncadd [#allocation10], 4294963200 }
  0x49   :  { %1038 = dma.done.wait [#allocation13], 2048  }
  0x4a   :  { %1039 = vsyncadd [#allocation13], 4294965248  ;;  %v1050_v0 = vmov 0.0   ;;  %vm1051_vm0 = vmmov 0   ;;  %v135_v1 = vld [vmem:[#allocation6 + $0x78] sm:$0xff]  ;;  %v134_v2 = vld [vmem:[#allocation6 + $0x70] sm:$0xff] }
  0x4b   :  { %706 = vmatprep.subr.mxu0 %v1050_v0  ;;  %738 = vmatprep.mubr.msk.f32.mxu0 %vm1051_vm0, %v1050_v0  ;;  %v133_v3 = vld [vmem:[#allocation6 + $0x68] sm:$0xff]  ;;  %v132_v4 = vld [vmem:[#allocation6 + $0x60] sm:$0xff]  ;;  %v231_v5 = vld [vmem:[#allocation8 + $0x78] sm:$0xff]  ;;  %s1052_s1 = smov [#allocation14]  }
  0x4c   :  { %741 = vmatprep.subr.mxu1 %v1050_v0  ;;  %773 = vmatprep.mubr.msk.f32.mxu1 %vm1051_vm0, %v1050_v0  ;;  %v131_v6 = vld [vmem:[#allocation6 + $0x58] sm:$0xff]  ;;  %v230_v7 = vld [vmem:[#allocation8 + $0x70] sm:$0xff]  ;;  %v229_v8 = vld [vmem:[#allocation8 + $0x68] sm:$0xff]  ;;  %s604_s12 = sshll.u32 %s1052_s1, 4  ;;  %s605_s12 = int_to_ptr.vmem [resolvable:$true] %s604_s12 }
  0x4d   :  { %707 = vmatpush3.msra.mxu0 %v135_v1  ;;  %742 = vmatpush3.msra.mxu1 %v231_v5  ;;  %v130_v9 = vld [vmem:[#allocation6 + $0x50] sm:$0xff]  ;;  %v228_v10 = vld [vmem:[#allocation8 + $0x60] sm:$0xff]  ;;  %v129_v11 = vld [vmem:[#allocation6 + $0x48] sm:$0xff]  ;;  %s1012_s13 = scalar_lea.vmem %s605_s12, 128  ;;  %p1017_p3 = scmp.lt.s32.totalorder %s605_s12, %s605_s12 }
  0x4e   :  { %708 = vmatprep.subr.mxu0 %v1050_v0  ;;  %743 = vmatprep.subr.mxu1 %v1050_v0  ;;  %v227_v12 = vld [vmem:[#allocation8 + $0x58] sm:$0xff]  ;;  %v128_v13 = vld [vmem:[#allocation6 + $0x40] sm:$0xff]  ;;  %v226_v14 = vld [vmem:[#allocation8 + $0x50] sm:$0xff]  ;;  %p1013_p2 = scmp.ne.s32.totalorder %s605_s12, %s1012_s13  ;;  %p1018_p4 = scmp.lt.s32.totalorder %s1012_s13, %s1012_s13 }
  0x4f   :  { %709 = vmatpush3.msra.mxu0 %v134_v2  ;;  %744 = vmatpush3.msra.mxu1 %v230_v7  ;;  %v127_v15 = vld [vmem:[#allocation6 + $0x38] sm:$0xff]  ;;  %v225_v16 = vld [vmem:[#allocation8 + $0x48] sm:$0xff]  ;;  %v126_v17 = vld [vmem:[#allocation6 + $0x30] sm:$0xff] }
  0x50   :  { %710 = vmatprep.subr.mxu0 %v1050_v0  ;;  %745 = vmatprep.subr.mxu1 %v1050_v0  ;;  %v224_v18 = vld [vmem:[#allocation8 + $0x40] sm:$0xff]  ;;  %v125_v19 = vld [vmem:[#allocation6 + $0x28] sm:$0xff]  ;;  %v223_v20 = vld [vmem:[#allocation8 + $0x38] sm:$0xff]  ;;  %p1019_p5 = por %p1018_p4, %p1017_p3 }
  0x51   :  { %711 = vmatpush3.msra.mxu0 %v133_v3  ;;  %746 = vmatpush3.msra.mxu1 %v229_v8  ;;  %v124_v21 = vld [vmem:[#allocation6 + $0x20] sm:$0xff]  ;;  %v222_v22 = vld [vmem:[#allocation8 + $0x30] sm:$0xff]  ;;  %v123_v23 = vld [vmem:[#allocation6 + $0x18] sm:$0xff] }
  0x52   :  { %712 = vmatprep.subr.mxu0 %v1050_v0  ;;  %747 = vmatprep.subr.mxu1 %v1050_v0  ;;  %v221_v24 = vld [vmem:[#allocation8 + $0x28] sm:$0xff]  ;;  %v122_v25 = vld [vmem:[#allocation6 + $0x10] sm:$0xff]  ;;  %v220_v26 = vld [vmem:[#allocation8 + $0x20] sm:$0xff]  ;;  %p1020_p6 = pnand %p1019_p5, %p1013_p2 }
  0x53   :  { %713 = vmatpush3.msra.mxu0 %v132_v4  ;;  %748 = vmatpush3.msra.mxu1 %v228_v10  ;;  %v121_v27 = vld [vmem:[#allocation6 + $0x8] sm:$0xff]  ;;  %v219_v28 = vld [vmem:[#allocation8 + $0x18] sm:$0xff]  ;;  %v120_v29 = vld [vmem:[#allocation6] sm:$0xff] }
  0x54   :  { %714 = vmatprep.subr.mxu0 %v1050_v0  ;;  %749 = vmatprep.subr.mxu1 %v1050_v0  ;;  %v119_v30 = vld [vmem:[#allocation3] sm:$0xff]  ;;  %v218_v31 = vld [vmem:[#allocation8 + $0x10] sm:$0xff]  ;;  %v217_v32 = vld [vmem:[#allocation8 + $0x8] sm:$0xff] }
  0x55   :  { %715 = vmatpush3.msra.mxu0 %v131_v6  ;;  %750 = vmatpush3.msra.mxu1 %v227_v12  ;;  %v216_v33 = vld [vmem:[#allocation8] sm:$0xff]  ;;  %v327_v34 = vld [vmem:[#allocation9 + $0x78] sm:$0xff]  ;;  %v326_v35 = vld [vmem:[#allocation9 + $0x70] sm:$0xff] }
  0x56   :  { %716 = vmatprep.subr.mxu0 %v1050_v0  ;;  %751 = vmatprep.subr.mxu1 %v1050_v0  ;;  %v325_v36 = vld [vmem:[#allocation9 + $0x68] sm:$0xff]  ;;  %v324_v37 = vld [vmem:[#allocation9 + $0x60] sm:$0xff]  ;;  %v323_v38 = vld [vmem:[#allocation9 + $0x58] sm:$0xff] }
  0x57   :  { %717 = vmatpush3.msra.mxu0 %v130_v9  ;;  %752 = vmatpush3.msra.mxu1 %v226_v14  ;;  %v322_v39 = vld [vmem:[#allocation9 + $0x50] sm:$0xff]  ;;  %v321_v40 = vld [vmem:[#allocation9 + $0x48] sm:$0xff]  ;;  %v320_v41 = vld [vmem:[#allocation9 + $0x40] sm:$0xff] }
  0x58   :  { %718 = vmatprep.subr.mxu0 %v1050_v0  ;;  %753 = vmatprep.subr.mxu1 %v1050_v0  ;;  %v319_v42 = vld [vmem:[#allocation9 + $0x38] sm:$0xff]  ;;  %v318_v43 = vld [vmem:[#allocation9 + $0x30] sm:$0xff]  ;;  %v317_v44 = vld [vmem:[#allocation9 + $0x28] sm:$0xff] }
  0x59   :  { %719 = vmatpush3.msra.mxu0 %v129_v11  ;;  %754 = vmatpush3.msra.mxu1 %v225_v16  ;;  %v316_v45 = vld [vmem:[#allocation9 + $0x20] sm:$0xff]  ;;  %v315_v46 = vld [vmem:[#allocation9 + $0x18] sm:$0xff]  ;;  %v314_v52 = vld [vmem:[#allocation9 + $0x10] sm:$0xff] }
  0x5a   :  { %720 = vmatprep.subr.mxu0 %v1050_v0  ;;  %755 = vmatprep.subr.mxu1 %v1050_v0  ;;  %v616_v47 = vld [vmem:[%s1256_s2] ss:$0 sm:$0xff]  ;;  %v313_v53 = vld [vmem:[#allocation9 + $0x8] sm:$0xff]  ;;  %v312_v54 = vld [vmem:[#allocation9] sm:$0xff] }
  0x5b   :  { %721 = vmatpush3.msra.mxu0 %v128_v13  ;;  %756 = vmatpush3.msra.mxu1 %v224_v18  ;;  %v423_v55 = vld [vmem:[#allocation11 + $0x78] sm:$0xff]  ;;  %v422_v56 = vld [vmem:[#allocation11 + $0x70] sm:$0xff]  ;;  %v421_v57 = vld [vmem:[#allocation11 + $0x68] sm:$0xff] }
  0x5c   :  { %722 = vmatprep.subr.mxu0 %v1050_v0  ;;  %757 = vmatprep.subr.mxu1 %v1050_v0  ;;  %v420_v58 = vld [vmem:[#allocation11 + $0x60] sm:$0xff]  ;;  %v419_v59 = vld [vmem:[#allocation11 + $0x58] sm:$0xff]  ;;  %v418_v60 = vld [vmem:[#allocation11 + $0x50] sm:$0xff] }
  0x5d   :  { %723 = vmatpush3.msra.mxu0 %v127_v15  ;;  %758 = vmatpush3.msra.mxu1 %v223_v20  ;;  %v417_v61 = vld [vmem:[#allocation11 + $0x48] sm:$0xff]  ;;  %v416_v62 = vld [vmem:[#allocation11 + $0x40] sm:$0xff]  ;;  %v415_v63 = vld [vmem:[#allocation11 + $0x38] sm:$0xff] }
  0x5e   :  { %724 = vmatprep.subr.mxu0 %v1050_v0  ;;  %759 = vmatprep.subr.mxu1 %v1050_v0  ;;  %v414_v1 = vld [vmem:[#allocation11 + $0x30] sm:$0xff]  ;;  %v413_v2 = vld [vmem:[#allocation11 + $0x28] sm:$0xff]  ;;  %v412_v3 = vld [vmem:[#allocation11 + $0x20] sm:$0xff] }
  0x5f   :  { %725 = vmatpush3.msra.mxu0 %v126_v17  ;;  %760 = vmatpush3.msra.mxu1 %v222_v22  ;;  %v411_v4 = vld [vmem:[#allocation11 + $0x18] sm:$0xff]  ;;  %v410_v10 = vld [vmem:[#allocation11 + $0x10] sm:$0xff]  ;;  %v409_v11 = vld [vmem:[#allocation11 + $0x8] sm:$0xff] }
  0x60   :  { %726 = vmatprep.subr.mxu0 %v1050_v0  ;;  %761 = vmatprep.subr.mxu1 %v1050_v0  ;;  %v617_v5 = vld [vmem:[%s1258_s4] ss:$0 sm:$0xff]  ;;  %v408_v12 = vld [vmem:[#allocation11] sm:$0xff]  ;;  %v518_v14 = vld [vmem:[#allocation12 + $0x70] sm:$0xff] }
  0x61   :  { %727 = vmatpush3.msra.mxu0 %v125_v19  ;;  %762 = vmatpush3.msra.mxu1 %v221_v24  ;;  %v519_v13 = vld [vmem:[#allocation12 + $0x78] sm:$0xff]  ;;  %v517_v15 = vld [vmem:[#allocation12 + $0x68] sm:$0xff]  ;;  %v516_v16 = vld [vmem:[#allocation12 + $0x60] sm:$0xff] }
  0x62   :  { %728 = vmatprep.subr.mxu0 %v1050_v0  ;;  %763 = vmatprep.subr.mxu1 %v1050_v0  ;;  %v515_v17 = vld [vmem:[#allocation12 + $0x58] sm:$0xff]  ;;  %v514_v18 = vld [vmem:[#allocation12 + $0x50] sm:$0xff]  ;;  %v513_v19 = vld [vmem:[#allocation12 + $0x48] sm:$0xff] }
  0x63   :  { %729 = vmatpush3.msra.mxu0 %v124_v21  ;;  %764 = vmatpush3.msra.mxu1 %v220_v26  ;;  %v512_v20 = vld [vmem:[#allocation12 + $0x40] sm:$0xff]  ;;  %v511_v21 = vld [vmem:[#allocation12 + $0x38] sm:$0xff]  ;;  %v510_v22 = vld [vmem:[#allocation12 + $0x30] sm:$0xff] }
  0x64   :  { %730 = vmatprep.subr.mxu0 %v1050_v0  ;;  %765 = vmatprep.subr.mxu1 %v1050_v0  ;;  %v508_v24 = vld [vmem:[#allocation12 + $0x20] sm:$0xff]  ;;  %v618_v26 = vld [vmem:[%s1260_s6] ss:$0 sm:$0xff] }
  0x65   :  { %731 = vmatpush3.msra.mxu0 %v123_v23  ;;  %766 = vmatpush3.msra.mxu1 %v219_v28  ;;  %v509_v23 = vld [vmem:[#allocation12 + $0x28] sm:$0xff] }
  0x66   :  { %732 = vmatprep.subr.mxu0 %v1050_v0  ;;  %767 = vmatprep.subr.mxu1 %v1050_v0 }
  0x67   :  { %733 = vmatpush3.msra.mxu0 %v122_v25  ;;  %768 = vmatpush3.msra.mxu1 %v218_v31  ;;  %v507_v25 = vld [vmem:[#allocation12 + $0x18] sm:$0xff]  ;;  %v506_v31 = vld [vmem:[#allocation12 + $0x10] sm:$0xff] }
  0x68   :  { %734 = vmatprep.subr.mxu0 %v1050_v0  ;;  %769 = vmatprep.subr.mxu1 %v1050_v0 }
  0x69   :  { %735 = vmatpush3.msra.mxu0 %v121_v27  ;;  %770 = vmatpush3.msra.mxu1 %v217_v32  ;;  %v505_v32 = vld [vmem:[#allocation12 + $0x8] sm:$0xff] }
  0x6a   :  { %736 = vmatprep.subr.mxu0 %v1050_v0  ;;  %771 = vmatprep.subr.mxu1 %v1050_v0 }
  0x6b   :  { %737 = vmatpush3.msra.mxu0 %v120_v29  ;;  %772 = vmatpush3.msra.mxu1 %v216_v33  ;;  %v504_v33 = vld [vmem:[#allocation12] sm:$0xff] }
  0x6c   :  { %739 = vmatmul.mubr.f32.vlgmr.msra.gmra.mxu0 %v119_v30  ;;  %776 = vmatprep.subr.mxu0 %v1050_v0 }
  0x6d   :  { %808 = vmatprep.mubr.msk.f32.mxu0 %vm1051_vm0, %v1050_v0  ;;  %811 = vmatprep.subr.mxu1 %v1050_v0 }
  0x6e   :  { %777 = vmatpush3.msra.mxu0 %v327_v34  ;;  %v619_v34 = vld [vmem:[%s1262_s8] ss:$0 sm:$0xff] }
  0x6f   :  { %778 = vmatprep.subr.mxu0 %v1050_v0 }
  0x70   :  { %779 = vmatpush3.msra.mxu0 %v326_v35 }
  0x71   :  { %780 = vmatprep.subr.mxu0 %v1050_v0 }
  0x72   :  { %781 = vmatpush3.msra.mxu0 %v325_v36 }
  0x73   :  { %782 = vmatprep.subr.mxu0 %v1050_v0 }
  0x74   :  { %783 = vmatpush3.msra.mxu0 %v324_v37 }
  0x75   :  { %784 = vmatprep.subr.mxu0 %v1050_v0 }
  0x76   :  { %785 = vmatpush3.msra.mxu0 %v323_v38 }
  0x77   :  { %786 = vmatprep.subr.mxu0 %v1050_v0 }
  0x78   :  { %787 = vmatpush3.msra.mxu0 %v322_v39  ;;  %v620_v39 = vld [vmem:[%s1264_s10] ss:$0 sm:$0xff] }
  0x79   :  { %788 = vmatprep.subr.mxu0 %v1050_v0 }
  0x7a   :  { %789 = vmatpush3.msra.mxu0 %v321_v40 }
  0x7b   :  { %790 = vmatprep.subr.mxu0 %v1050_v0 }
  0x7c   :  { %791 = vmatpush3.msra.mxu0 %v320_v41 }
  0x7d   :  { %792 = vmatprep.subr.mxu0 %v1050_v0 }
  0x7e   :  { %793 = vmatpush3.msra.mxu0 %v319_v42 }
  0x7f   :  { %794 = vmatprep.subr.mxu0 %v1050_v0 }
  0x80   :  { %795 = vmatpush3.msra.mxu0 %v318_v43 }
  0x81   :  { %796 = vmatprep.subr.mxu0 %v1050_v0 }
  0x82   :  { %797 = vmatpush3.msra.mxu0 %v317_v44 }
  0x83   :  { %798 = vmatprep.subr.mxu0 %v1050_v0 }
  0x84   :  { %799 = vmatpush3.msra.mxu0 %v316_v45 }
  0x85   :  { %800 = vmatprep.subr.mxu0 %v1050_v0 }
  0x86   :  { %801 = vmatpush3.msra.mxu0 %v315_v46 }
  0x87   :  { %802 = vmatprep.subr.mxu0 %v1050_v0 }
  0x88   :  { %803 = vmatpush3.msra.mxu0 %v314_v52 }
  0x89   :  { %804 = vmatprep.subr.mxu0 %v1050_v0 }
  0x8a   :  { %805 = vmatpush3.msra.mxu0 %v313_v53 }
  0x8b   :  { %806 = vmatprep.subr.mxu0 %v1050_v0 }
  0x8c   :  { %807 = vmatpush3.msra.mxu0 %v312_v54 }
  0x8d   :  { %846 = vmatprep.subr.mxu0 %v1050_v0 }
 0x12c   :  { %v209_v48 = vpop.f32.mrf.mxu0 }
 0x12d   :  { %v210_v49 = vadd.f32 %v616_v47, %v209_v48 }
 0x12e   :  { %v740_v50 = vpop.f32.mrf.mxu0 }
 0x12f   :  { %v213_v51 = vmax.f32 %v210_v49, 0.0 }
 0x131   :  { %774 = vmatmul.mubr.f32.vlgmr.msra.gmra.mxu1 %v213_v51 }
 0x132   :  { %843 = vmatprep.mubr.msk.f32.mxu1 %vm1051_vm0, %v1050_v0  ;;  %812 = vmatpush3.msra.mxu1 %v423_v55 }
 0x133   :  { %813 = vmatprep.subr.mxu1 %v1050_v0 }
 0x134   :  { %814 = vmatpush3.msra.mxu1 %v422_v56 }
 0x135   :  { %815 = vmatprep.subr.mxu1 %v1050_v0 }
 0x136   :  { %816 = vmatpush3.msra.mxu1 %v421_v57 }
 0x137   :  { %817 = vmatprep.subr.mxu1 %v1050_v0 }
 0x138   :  { %818 = vmatpush3.msra.mxu1 %v420_v58 }
 0x139   :  { %819 = vmatprep.subr.mxu1 %v1050_v0 }
 0x13a   :  { %820 = vmatpush3.msra.mxu1 %v419_v59 }
 0x13b   :  { %821 = vmatprep.subr.mxu1 %v1050_v0 }
 0x13c   :  { %822 = vmatpush3.msra.mxu1 %v418_v60 }
 0x13d   :  { %823 = vmatprep.subr.mxu1 %v1050_v0 }
 0x13e   :  { %824 = vmatpush3.msra.mxu1 %v417_v61 }
 0x13f   :  { %825 = vmatprep.subr.mxu1 %v1050_v0 }
 0x140   :  { %826 = vmatpush3.msra.mxu1 %v416_v62 }
 0x141   :  { %827 = vmatprep.subr.mxu1 %v1050_v0 }
 0x142   :  { %828 = vmatpush3.msra.mxu1 %v415_v63 }
 0x143   :  { %829 = vmatprep.subr.mxu1 %v1050_v0 }
 0x144   :  { %830 = vmatpush3.msra.mxu1 %v414_v1 }
 0x145   :  { %831 = vmatprep.subr.mxu1 %v1050_v0 }
 0x146   :  { %832 = vmatpush3.msra.mxu1 %v413_v2 }
 0x147   :  { %833 = vmatprep.subr.mxu1 %v1050_v0 }
 0x148   :  { %834 = vmatpush3.msra.mxu1 %v412_v3 }
 0x149   :  { %835 = vmatprep.subr.mxu1 %v1050_v0 }
 0x14a   :  { %836 = vmatpush3.msra.mxu1 %v411_v4 }
 0x14b   :  { %837 = vmatprep.subr.mxu1 %v1050_v0 }
 0x14c   :  { %838 = vmatpush3.msra.mxu1 %v410_v10 }
 0x14d   :  { %839 = vmatprep.subr.mxu1 %v1050_v0 }
 0x14e   :  { %840 = vmatpush3.msra.mxu1 %v409_v11 }
 0x14f   :  { %841 = vmatprep.subr.mxu1 %v1050_v0 }
 0x150   :  { %842 = vmatpush3.msra.mxu1 %v408_v12 }
 0x1f1   :  { %v305_v6 = vpop.f32.mrf.mxu1 }
 0x1f2   :  { %v306_v7 = vadd.f32 %v617_v5, %v305_v6 }
 0x1f3   :  { %v775_v8 = vpop.f32.mrf.mxu1 }
 0x1f4   :  { %v309_v9 = vmax.f32 %v306_v7, 0.0 }
 0x1f6   :  { %809 = vmatmul.mubr.f32.vlgmr.msra.gmra.mxu0 %v309_v9 }
 0x1f7   :  { %878 = vmatprep.mubr.msk.f32.mxu0 %vm1051_vm0, %v1050_v0  ;;  %847 = vmatpush3.msra.mxu0 %v519_v13 }
 0x1f8   :  { %848 = vmatprep.subr.mxu0 %v1050_v0 }
 0x1f9   :  { %849 = vmatpush3.msra.mxu0 %v518_v14 }
 0x1fa   :  { %850 = vmatprep.subr.mxu0 %v1050_v0 }
 0x1fb   :  { %851 = vmatpush3.msra.mxu0 %v517_v15 }
 0x1fc   :  { %852 = vmatprep.subr.mxu0 %v1050_v0 }
 0x1fd   :  { %853 = vmatpush3.msra.mxu0 %v516_v16 }
 0x1fe   :  { %854 = vmatprep.subr.mxu0 %v1050_v0 }
 0x1ff   :  { %855 = vmatpush3.msra.mxu0 %v515_v17 }
 0x200   :  { %856 = vmatprep.subr.mxu0 %v1050_v0 }
 0x201   :  { %857 = vmatpush3.msra.mxu0 %v514_v18 }
 0x202   :  { %858 = vmatprep.subr.mxu0 %v1050_v0 }
 0x203   :  { %859 = vmatpush3.msra.mxu0 %v513_v19 }
 0x204   :  { %860 = vmatprep.subr.mxu0 %v1050_v0 }
 0x205   :  { %861 = vmatpush3.msra.mxu0 %v512_v20 }
 0x206   :  { %862 = vmatprep.subr.mxu0 %v1050_v0 }
 0x207   :  { %863 = vmatpush3.msra.mxu0 %v511_v21 }
 0x208   :  { %864 = vmatprep.subr.mxu0 %v1050_v0 }
 0x209   :  { %865 = vmatpush3.msra.mxu0 %v510_v22 }
 0x20a   :  { %866 = vmatprep.subr.mxu0 %v1050_v0 }
 0x20b   :  { %867 = vmatpush3.msra.mxu0 %v509_v23 }
 0x20c   :  { %868 = vmatprep.subr.mxu0 %v1050_v0 }
 0x20d   :  { %869 = vmatpush3.msra.mxu0 %v508_v24 }
 0x20e   :  { %870 = vmatprep.subr.mxu0 %v1050_v0 }
 0x20f   :  { %871 = vmatpush3.msra.mxu0 %v507_v25 }
 0x210   :  { %872 = vmatprep.subr.mxu0 %v1050_v0 }
 0x211   :  { %873 = vmatpush3.msra.mxu0 %v506_v31 }
 0x212   :  { %874 = vmatprep.subr.mxu0 %v1050_v0 }
 0x213   :  { %875 = vmatpush3.msra.mxu0 %v505_v32 }
 0x214   :  { %876 = vmatprep.subr.mxu0 %v1050_v0 }
 0x215   :  { %877 = vmatpush3.msra.mxu0 %v504_v33 }
 0x2b6   :  { %v401_v27 = vpop.f32.mrf.mxu0 }
 0x2b7   :  { %v402_v28 = vadd.f32 %v618_v26, %v401_v27 }
 0x2b8   :  { %v810_v29 = vpop.f32.mrf.mxu0 }
 0x2b9   :  { %v405_v30 = vmax.f32 %v402_v28, 0.0 }
 0x2bb   :  { %844 = vmatmul.mubr.f32.vlgmr.msra.gmra.mxu1 %v405_v30 }
 0x37b   :  { %v497_v35 = vpop.f32.mrf.mxu1 }
 0x37c   :  { %v498_v36 = vadd.f32 %v619_v34, %v497_v35 }
 0x37d   :  { %v845_v37 = vpop.f32.mrf.mxu1 }
 0x37e   :  { %v501_v38 = vmax.f32 %v498_v36, 0.0 }
 0x380   :  { %879 = vmatmul.mubr.f32.vlgmr.msra.gmra.mxu0 %v501_v38 }
 0x440   :  { %v593_v40 = vpop.f32.mrf.mxu0 }
 0x441   :  { %v594_v41 = vadd.f32 %v620_v39, %v593_v40 }
 0x442   :  { %v880_v0 = vpop.f32.mrf.mxu0 }
 0x443   :  { %597 = vst [vmem:[#allocation14] sm:$0xff] %v594_v41 }
 0x444   :  { %1023 = shalt.err (!%p1020_p6)
}
 0x445   :  { %607 = dma.vmem_to_hbm [thread:$0]  %s605_s12, 128, %s1265_s11, [#allocation5]  }
 0x446   :  { %1040 = dma.done.wait [#allocation5], 128  }
 0x447   :  { %1041 = vsyncadd [#allocation5], 4294967168 }
 0x448   :  { %611 = vsyncpa [#allocation4], 1 }
 0x449   :  { %612 = vsyncpa [#allocation7], 1 }
 0x44a   :  { %613 = vsyncpa [#allocation10], 1 }
 0x44b   :  { %614 = vsyncpa [#allocation13], 1 }
 0x44c   :  { %615 = vsyncpa [#allocation5], 1 }

</bundles_post_ra>
